<compile_context>
chip_gen: v5e
topology: v5e:2x2
jax: 0.10.0
libtpu: 0.0.40
codegen_flags: <defaults>
</compile_context>

<pallas_src>
import math
from functools import partial

import jax
import jax.numpy as jnp
from jax import lax
from jax.experimental import pallas as pl
from jax.experimental.pallas import tpu as pltpu


def self_attention_2d_kernel(x_ref, win_ref, bin_ref, wout_ref, bout_ref, o_ref,
                             *, num_heads, batch_per_block, eps):
    # x_ref: (batch_per_block, C, S) f32 in channels-first layout (residual source).
    _, C, S = x_ref.shape
    dh = C // num_heads

    w_in = win_ref[...]        # (3C, C) bf16 — LayerNorm affine + 1/sqrt(dh) Q-scale folded in
    b_in = bin_ref[...]        # (3C, 1) f32  — matching folded bias
    w_out = wout_ref[...]      # (C, C)  bf16 — used as-is (transposed-layout matmul)
    b_out = bout_ref[...]      # (C, 1)  f32

    # Statically unrolled per-batch loop (batch_per_block is 1 or 2 here).
    # TODO(synk): switch to lax.fori_loop(unroll=True) if batch_per_block grows.
    for b in range(batch_per_block):
        x = x_ref[b]                                               # (C, S) f32

        # --- LayerNorm statistics over channels (sublane axis), f32 ---
        mean = jnp.mean(x, axis=0, keepdims=True)                  # (1, S)
        xc = x - mean
        var = jnp.mean(xc * xc, axis=0, keepdims=True)             # (1, S)
        xhat = (xc * lax.rsqrt(var + eps)).astype(jnp.bfloat16)    # (C, S) bf16

        # --- fused QKV projection, transposed layout: (3C,C) @ (C,S) -> (3C,S) ---
        qkv = jnp.dot(w_in, xhat,
                      preferred_element_type=jnp.float32) + b_in   # (3C, S) f32

        # --- head-batched attention: heads live on the sublane axis (cheap split) ---
        q = jnp.swapaxes(qkv[0:C].reshape(num_heads, dh, S), 1, 2)             # (H, S, dh)
        q = q.astype(jnp.bfloat16)
        k = qkv[C:2 * C].reshape(num_heads, dh, S).astype(jnp.bfloat16)        # (H, dh, S)
        v = qkv[2 * C:3 * C].reshape(num_heads, dh, S).astype(jnp.bfloat16)    # (H, dh, S)

        # scores[h,q,k] = sum_d q[h,q,d] * k[h,d,k]   (Q pre-scaled by 1/sqrt(dh))
        s = jnp.einsum('hqd,hdk->hqk', q, k,
                       preferred_element_type=jnp.float32)          # (H, S, S) f32
        s = s - jnp.max(s, axis=-1, keepdims=True)
        p = jnp.exp(s)                                               # f32 (v5e has no bf16 EUP)
        p = p * pl.reciprocal(jnp.sum(p, axis=-1, keepdims=True), approx=True)

        # o[h,d,q] = sum_k v[h,d,k] * p[h,q,k]
        o = jnp.einsum('hdk,hqk->hdq', v, p.astype(jnp.bfloat16),
                       preferred_element_type=jnp.float32)           # (H, dh, S) f32
        attn_t = o.reshape(C, S).astype(jnp.bfloat16)                # heads merged -> (C, S)

        # --- single output projection per batch + bias + residual ---
        out = jnp.dot(w_out, attn_t, preferred_element_type=jnp.float32)   # (C, S) f32
        o_ref[b] = (x + out + b_out).astype(o_ref.dtype)


def _num_tensorcores():
    """Best-effort detection of dual-TensorCore chips (v7x, v4/v5p megacore)."""
    try:
        kind = jax.devices()[0].device_kind.lower()
    except Exception:
        return 1
    return 2 if any(t in kind for t in ("v7", "v4", "v5p")) else 1


def prepare_params(params, *, num_heads):
    """One-time host-side prep (call at init, NOT per forward).

    Folds the LayerNorm affine and the 1/sqrt(head_dim) Q scaling into the QKV
    projection:  W_in(g*xhat + b_ln) + b_in == (S_q . W_in . g) xhat + S_q.(W_in b_ln + b_in).
    """
    C = params["ln_w"].shape[0]
    dh = C // num_heads
    scale = 1.0 / math.sqrt(dh)
    scale_vec = jnp.concatenate([jnp.full((C,), scale, jnp.float32),
                                 jnp.ones((2 * C,), jnp.float32)])    # scales Q rows only
    w_in = params["in_proj_w"].astype(jnp.float32)                    # (3C, C)
    b_in = params["in_proj_b"].astype(jnp.float32)                    # (3C,)
    ln_w = params["ln_w"].astype(jnp.float32)
    ln_b = params["ln_b"].astype(jnp.float32)
    w_eff = (w_in * scale_vec[:, None]) * ln_w[None, :]
    b_eff = scale_vec * (w_in @ ln_b + b_in)
    return {
        "w_in": w_eff.astype(jnp.bfloat16),                           # (3C, C)
        "b_in": b_eff.reshape(3 * C, 1),                              # (3C, 1) f32
        "w_out": params["out_proj_w"].astype(jnp.bfloat16),           # (C, C)
        "b_out": params["out_proj_b"].reshape(C, 1).astype(jnp.float32),
    }


def self_attention_2d(x_nchw, prepped, *, num_heads=4, eps=1e-5, batch_block=None):
    B, C, H, W = x_nchw.shape
    assert C % num_heads == 0
    S = H * W

    if batch_block is None:
        # Dual-TC chips: split the batch across the "parallel" grid axis so both cores
        # work.  Single-TC v5e/v6e: fold the whole batch into one grid step.
        batch_block = B // 2 if (_num_tensorcores() >= 2 and B % 2 == 0) else B
    assert B % batch_block == 0
    num_blocks = B // batch_block

    x3 = x_nchw.reshape(B, C, S)           # NCHW -> (B, C, S): free, no transpose

    kernel = partial(self_attention_2d_kernel, num_heads=num_heads,
                     batch_per_block=batch_block, eps=eps)

    out3 = pl.pallas_call(
        kernel,
        out_shape=jax.ShapeDtypeStruct((B, C, S), x_nchw.dtype),
        grid_spec=pltpu.PrefetchScalarGridSpec(
            num_scalar_prefetch=0,
            grid=(num_blocks,),
            in_specs=[
                pl.BlockSpec((batch_block, C, S), lambda i: (i, 0, 0)),   # x (residual)
                pl.BlockSpec((3 * C, C), lambda i: (0, 0)),               # folded W_in
                pl.BlockSpec((3 * C, 1), lambda i: (0, 0)),               # folded b_in
                pl.BlockSpec((C, C), lambda i: (0, 0)),                   # W_out
                pl.BlockSpec((C, 1), lambda i: (0, 0)),                   # b_out
            ],
            out_specs=pl.BlockSpec((batch_block, C, S), lambda i: (i, 0, 0)),
        ),
        compiler_params=pltpu.CompilerParams(dimension_semantics=("parallel",)),
    )(x3, prepped["w_in"], prepped["b_in"], prepped["w_out"], prepped["b_out"])

    return out3.reshape(B, C, H, W)        # (B, C, S) -> NCHW: free


def reference(x_nchw, params, *, num_heads=4, eps=1e-5):
    """Pure-JAX f32 reference (mirrors nn.LayerNorm + nn.MultiheadAttention + residual)."""
    B, C, H, W = x_nchw.shape
    S = H * W
    dh = C // num_heads
    x = jnp.transpose(x_nchw, (0, 2, 3, 1)).reshape(B, S, C)
    mean = x.mean(-1, keepdims=True)
    var = ((x - mean) ** 2).mean(-1, keepdims=True)
    xn = (x - mean) / jnp.sqrt(var + eps) * params["ln_w"] + params["ln_b"]
    qkv = xn @ params["in_proj_w"].T + params["in_proj_b"]
    q, k, v = jnp.split(qkv, 3, axis=-1)
    q = q.reshape(B, S, num_heads, dh).transpose(0, 2, 1, 3)
    k = k.reshape(B, S, num_heads, dh).transpose(0, 2, 1, 3)
    v = v.reshape(B, S, num_heads, dh).transpose(0, 2, 1, 3)
    s = jnp.einsum("bhqd,bhkd->bhqk", q, k) / math.sqrt(dh)
    p = jax.nn.softmax(s, axis=-1)
    o = jnp.einsum("bhqk,bhkd->bhqd", p, v).transpose(0, 2, 1, 3).reshape(B, S, C)
    o = o @ params["out_proj_w"].T + params["out_proj_b"]
    out = x + o
    return jnp.transpose(out.reshape(B, H, W, C), (0, 3, 1, 2))


if __name__ == "__main__":
    B, C, H, W = 2, 16, 8, 8
    num_heads = 4

    key = jax.random.PRNGKey(0)
    kx, k1, k2, k3, k4, k5, k6 = jax.random.split(key, 7)

    x = jax.random.normal(kx, (B, C, H, W), jnp.float32)
    params = {
        "ln_w": 1.0 + 0.1 * jax.random.normal(k1, (C,), jnp.float32),
        "ln_b": 0.1 * jax.random.normal(k2, (C,), jnp.float32),
        "in_proj_w": 0.1 * jax.random.normal(k3, (3 * C, C), jnp.float32),
        "in_proj_b": 0.1 * jax.random.normal(k4, (3 * C,), jnp.float32),
        "out_proj_w": 0.1 * jax.random.normal(k5, (C, C), jnp.float32),
        "out_proj_b": 0.1 * jax.random.normal(k6, (C,), jnp.float32),
    }

    prepped = prepare_params(params, num_heads=num_heads)          # hoisted, one-time
    fwd = jax.jit(partial(self_attention_2d, num_heads=num_heads))

    out = jax.block_until_ready(fwd(x, prepped))
    ref = reference(x, params, num_heads=num_heads)

    assert out.shape == (B, C, H, W)
    # bf16 MXU operands (f32 accumulation) + approximate EUP reciprocal for softmax.
    err = float(jnp.max(jnp.abs(out - ref)))
    assert jnp.allclose(out, ref, rtol=2e-2, atol=2e-2), (
        f"mismatch vs JAX reference (max abs err {err:.3e})")

    print("KERNEL_OK")
</pallas_src>

<mosaic_0001>
module attributes {stable_mosaic.version = 11 : i64} {
  func.func @self_attention_2d_kernel(%arg0: i32, %arg1: memref<2x16x64xf32, #tpu.memory_space<vmem>>, %arg2: memref<48x16xbf16, #tpu.memory_space<vmem>>, %arg3: memref<48x1xf32, #tpu.memory_space<vmem>>, %arg4: memref<16x16xbf16, #tpu.memory_space<vmem>>, %arg5: memref<16x1xf32, #tpu.memory_space<vmem>>, %arg6: memref<2x16x64xf32, #tpu.memory_space<vmem>>) attributes {dimension_semantics = [#tpu.dimension_semantics<parallel>], iteration_bounds = array<i64: 1>, scalar_prefetch = 0 : i64, scratch_operands = 0 : i64, tpu.core_type = #tpu.core_type<tc>, window_params = [{transform_indices = @transform_0, window_bounds = array<i64: 2, 16, 64>}, {pipeline_mode = #tpu.pipeline_mode<synchronous>, transform_indices = @transform_1, window_bounds = array<i64: 48, 16>}, {pipeline_mode = #tpu.pipeline_mode<synchronous>, transform_indices = @transform_2, window_bounds = array<i64: 48, 1>}, {pipeline_mode = #tpu.pipeline_mode<synchronous>, transform_indices = @transform_3, window_bounds = array<i64: 16, 16>}, {pipeline_mode = #tpu.pipeline_mode<synchronous>, transform_indices = @transform_4, window_bounds = array<i64: 16, 1>}, {transform_indices = @transform_5, window_bounds = array<i64: 2, 16, 64>}]} {
    %c0 = arith.constant 0 : index
    %c0_0 = arith.constant 0 : index
    %0 = vector.load %arg2[%c0, %c0_0] : memref<48x16xbf16, #tpu.memory_space<vmem>>, vector<48x16xbf16>
    %c0_1 = arith.constant 0 : index
    %c0_2 = arith.constant 0 : index
    %1 = vector.load %arg3[%c0_1, %c0_2] : memref<48x1xf32, #tpu.memory_space<vmem>>, vector<48x1xf32>
    %c0_3 = arith.constant 0 : index
    %c0_4 = arith.constant 0 : index
    %2 = vector.load %arg4[%c0_3, %c0_4] : memref<16x16xbf16, #tpu.memory_space<vmem>>, vector<16x16xbf16>
    %c0_5 = arith.constant 0 : index
    %c0_6 = arith.constant 0 : index
    %3 = vector.load %arg5[%c0_5, %c0_6] : memref<16x1xf32, #tpu.memory_space<vmem>>, vector<16x1xf32>
    %c0_7 = arith.constant 0 : index
    %c0_8 = arith.constant 0 : index
    %c0_9 = arith.constant 0 : index
    %4 = vector.load %arg1[%c0_7, %c0_8, %c0_9] : memref<2x16x64xf32, #tpu.memory_space<vmem>>, vector<1x16x64xf32>
    %5 = vector.shape_cast %4 : vector<1x16x64xf32> to vector<16x64xf32>
    %cst = arith.constant dense<0.000000e+00> : vector<64xf32>
    %6 = vector.multi_reduction <add>, %5, %cst [0] : vector<16x64xf32> to vector<64xf32>
    %7 = vector.shape_cast %6 : vector<64xf32> to vector<1x64xf32>
    %cst_10 = arith.constant 1.600000e+01 : f32
    %8 = vector.broadcast %cst_10 : f32 to vector<1x64xf32>
    %9 = arith.divf %7, %8 : vector<1x64xf32>
    %10 = vector.broadcast %9 : vector<1x64xf32> to vector<16x64xf32>
    %11 = arith.subf %5, %10 : vector<16x64xf32>
    %12 = arith.mulf %11, %11 : vector<16x64xf32>
    %cst_11 = arith.constant dense<0.000000e+00> : vector<64xf32>
    %13 = vector.multi_reduction <add>, %12, %cst_11 [0] : vector<16x64xf32> to vector<64xf32>
    %14 = vector.shape_cast %13 : vector<64xf32> to vector<1x64xf32>
    %cst_12 = arith.constant 1.600000e+01 : f32
    %15 = vector.broadcast %cst_12 : f32 to vector<1x64xf32>
    %16 = arith.divf %14, %15 : vector<1x64xf32>
    %cst_13 = arith.constant 9.99999974E-6 : f32
    %17 = vector.broadcast %cst_13 : f32 to vector<1x64xf32>
    %18 = arith.addf %16, %17 : vector<1x64xf32>
    %19 = math.rsqrt %18 : vector<1x64xf32>
    %20 = vector.broadcast %19 : vector<1x64xf32> to vector<16x64xf32>
    %21 = arith.mulf %11, %20 : vector<16x64xf32>
    %22 = arith.truncf %21 : vector<16x64xf32> to vector<16x64xbf16>
    %cst_14 = arith.constant dense<0.000000e+00> : vector<48x64xf32>
    %23 = tpu.matmul %0, %22, %cst_14 {dimension_numbers = #tpu.dot_dimension_numbers<[1], [0], [0], [1], [0, 0, 1, 1], [], []>} : vector<48x16xbf16>, vector<16x64xbf16>, vector<48x64xf32> -> vector<48x64xf32>
    %24 = vector.broadcast %1 : vector<48x1xf32> to vector<48x64xf32>
    %25 = arith.addf %23, %24 : vector<48x64xf32>
    %26 = vector.extract_strided_slice %25 {offsets = [0, 0], sizes = [16, 64], strides = [1, 1]} : vector<48x64xf32> to vector<16x64xf32>
    %27 = vector.shape_cast %26 : vector<16x64xf32> to vector<4x4x64xf32>
    %28 = tpu.transpose %27, [0, 2, 1] : vector<4x4x64xf32> -> vector<4x64x4xf32>
    %29 = arith.truncf %28 : vector<4x64x4xf32> to vector<4x64x4xbf16>
    %30 = vector.extract_strided_slice %25 {offsets = [16, 0], sizes = [16, 64], strides = [1, 1]} : vector<48x64xf32> to vector<16x64xf32>
    %31 = vector.shape_cast %30 : vector<16x64xf32> to vector<4x4x64xf32>
    %32 = arith.truncf %31 : vector<4x4x64xf32> to vector<4x4x64xbf16>
    %33 = vector.extract_strided_slice %25 {offsets = [32, 0], sizes = [16, 64], strides = [1, 1]} : vector<48x64xf32> to vector<16x64xf32>
    %34 = vector.shape_cast %33 : vector<16x64xf32> to vector<4x4x64xf32>
    %35 = arith.truncf %34 : vector<4x4x64xf32> to vector<4x4x64xbf16>
    "tpu.trace_start"() <{level = 10 : i32, message = "hqd,hdk->hqk"}> : () -> ()
    %cst_15 = arith.constant dense<0.000000e+00> : vector<4x64x64xf32>
    %36 = tpu.matmul %29, %32, %cst_15 {dimension_numbers = #tpu.dot_dimension_numbers<[2], [1], [1], [2], [0, 0, 0, 1, 1, 2], [0], [0]>} : vector<4x64x4xbf16>, vector<4x4x64xbf16>, vector<4x64x64xf32> -> vector<4x64x64xf32>
    "tpu.trace_stop"() : () -> ()
    %cst_16 = arith.constant dense<0xFF800000> : vector<4x64xf32>
    %37 = vector.multi_reduction <maximumf>, %36, %cst_16 [2] : vector<4x64x64xf32> to vector<4x64xf32>
    %38 = vector.shape_cast %37 : vector<4x64xf32> to vector<4x64x1xf32>
    %39 = vector.broadcast %38 : vector<4x64x1xf32> to vector<4x64x64xf32>
    %40 = arith.subf %36, %39 : vector<4x64x64xf32>
    %41 = math.exp %40 : vector<4x64x64xf32>
    %cst_17 = arith.constant dense<0.000000e+00> : vector<4x64xf32>
    %42 = vector.multi_reduction <add>, %41, %cst_17 [2] : vector<4x64x64xf32> to vector<4x64xf32>
    %43 = vector.shape_cast %42 : vector<4x64xf32> to vector<4x64x1xf32>
    %44 = tpu.reciprocal %43 {approx = true} : vector<4x64x1xf32> -> vector<4x64x1xf32>
    %45 = vector.broadcast %44 : vector<4x64x1xf32> to vector<4x64x64xf32>
    %46 = arith.mulf %41, %45 : vector<4x64x64xf32>
    %47 = arith.truncf %46 : vector<4x64x64xf32> to vector<4x64x64xbf16>
    "tpu.trace_start"() <{level = 10 : i32, message = "hdk,hqk->hdq"}> : () -> ()
    %cst_18 = arith.constant dense<0.000000e+00> : vector<4x4x64xf32>
    %48 = tpu.matmul %35, %47, %cst_18 {dimension_numbers = #tpu.dot_dimension_numbers<[2], [2], [1], [1], [0, 0, 0, 1, 1, 1], [0], [0]>} : vector<4x4x64xbf16>, vector<4x64x64xbf16>, vector<4x4x64xf32> -> vector<4x4x64xf32>
    "tpu.trace_stop"() : () -> ()
    %49 = vector.shape_cast %48 : vector<4x4x64xf32> to vector<16x64xf32>
    %50 = arith.truncf %49 : vector<16x64xf32> to vector<16x64xbf16>
    %cst_19 = arith.constant dense<0.000000e+00> : vector<16x64xf32>
    %51 = tpu.matmul %2, %50, %cst_19 {dimension_numbers = #tpu.dot_dimension_numbers<[1], [0], [0], [1], [0, 0, 1, 1], [], []>} : vector<16x16xbf16>, vector<16x64xbf16>, vector<16x64xf32> -> vector<16x64xf32>
    %52 = arith.addf %5, %51 : vector<16x64xf32>
    %53 = vector.broadcast %3 : vector<16x1xf32> to vector<16x64xf32>
    %54 = arith.addf %52, %53 : vector<16x64xf32>
    %c0_20 = arith.constant 0 : index
    %c0_21 = arith.constant 0 : index
    %c0_22 = arith.constant 0 : index
    %55 = vector.load %arg6[%c0_20, %c0_21, %c0_22] : memref<2x16x64xf32, #tpu.memory_space<vmem>>, vector<1x16x64xf32>
    %56 = vector.shape_cast %55 : vector<1x16x64xf32> to vector<16x64xf32>
    %57 = vector.shape_cast %54 : vector<16x64xf32> to vector<1x16x64xf32>
    tpu.vector_store %arg6[%c0_20, %c0_21, %c0_22], %57 {strides = array<i32>} : memref<2x16x64xf32, #tpu.memory_space<vmem>>, vector<1x16x64xf32>,
    %c1 = arith.constant 1 : index
    %c0_23 = arith.constant 0 : index
    %c0_24 = arith.constant 0 : index
    %58 = vector.load %arg1[%c1, %c0_23, %c0_24] : memref<2x16x64xf32, #tpu.memory_space<vmem>>, vector<1x16x64xf32>
    %59 = vector.shape_cast %58 : vector<1x16x64xf32> to vector<16x64xf32>
    %cst_25 = arith.constant dense<0.000000e+00> : vector<64xf32>
    %60 = vector.multi_reduction <add>, %59, %cst_25 [0] : vector<16x64xf32> to vector<64xf32>
    %61 = vector.shape_cast %60 : vector<64xf32> to vector<1x64xf32>
    %cst_26 = arith.constant 1.600000e+01 : f32
    %62 = vector.broadcast %cst_26 : f32 to vector<1x64xf32>
    %63 = arith.divf %61, %62 : vector<1x64xf32>
    %64 = vector.broadcast %63 : vector<1x64xf32> to vector<16x64xf32>
    %65 = arith.subf %59, %64 : vector<16x64xf32>
    %66 = arith.mulf %65, %65 : vector<16x64xf32>
    %cst_27 = arith.constant dense<0.000000e+00> : vector<64xf32>
    %67 = vector.multi_reduction <add>, %66, %cst_27 [0] : vector<16x64xf32> to vector<64xf32>
    %68 = vector.shape_cast %67 : vector<64xf32> to vector<1x64xf32>
    %cst_28 = arith.constant 1.600000e+01 : f32
    %69 = vector.broadcast %cst_28 : f32 to vector<1x64xf32>
    %70 = arith.divf %68, %69 : vector<1x64xf32>
    %cst_29 = arith.constant 9.99999974E-6 : f32
    %71 = vector.broadcast %cst_29 : f32 to vector<1x64xf32>
    %72 = arith.addf %70, %71 : vector<1x64xf32>
    %73 = math.rsqrt %72 : vector<1x64xf32>
    %74 = vector.broadcast %73 : vector<1x64xf32> to vector<16x64xf32>
    %75 = arith.mulf %65, %74 : vector<16x64xf32>
    %76 = arith.truncf %75 : vector<16x64xf32> to vector<16x64xbf16>
    %cst_30 = arith.constant dense<0.000000e+00> : vector<48x64xf32>
    %77 = tpu.matmul %0, %76, %cst_30 {dimension_numbers = #tpu.dot_dimension_numbers<[1], [0], [0], [1], [0, 0, 1, 1], [], []>} : vector<48x16xbf16>, vector<16x64xbf16>, vector<48x64xf32> -> vector<48x64xf32>
    %78 = vector.broadcast %1 : vector<48x1xf32> to vector<48x64xf32>
    %79 = arith.addf %77, %78 : vector<48x64xf32>
    %80 = vector.extract_strided_slice %79 {offsets = [0, 0], sizes = [16, 64], strides = [1, 1]} : vector<48x64xf32> to vector<16x64xf32>
    %81 = vector.shape_cast %80 : vector<16x64xf32> to vector<4x4x64xf32>
    %82 = tpu.transpose %81, [0, 2, 1] : vector<4x4x64xf32> -> vector<4x64x4xf32>
    %83 = arith.truncf %82 : vector<4x64x4xf32> to vector<4x64x4xbf16>
    %84 = vector.extract_strided_slice %79 {offsets = [16, 0], sizes = [16, 64], strides = [1, 1]} : vector<48x64xf32> to vector<16x64xf32>
    %85 = vector.shape_cast %84 : vector<16x64xf32> to vector<4x4x64xf32>
    %86 = arith.truncf %85 : vector<4x4x64xf32> to vector<4x4x64xbf16>
    %87 = vector.extract_strided_slice %79 {offsets = [32, 0], sizes = [16, 64], strides = [1, 1]} : vector<48x64xf32> to vector<16x64xf32>
    %88 = vector.shape_cast %87 : vector<16x64xf32> to vector<4x4x64xf32>
    %89 = arith.truncf %88 : vector<4x4x64xf32> to vector<4x4x64xbf16>
    "tpu.trace_start"() <{level = 10 : i32, message = "hqd,hdk->hqk"}> : () -> ()
    %cst_31 = arith.constant dense<0.000000e+00> : vector<4x64x64xf32>
    %90 = tpu.matmul %83, %86, %cst_31 {dimension_numbers = #tpu.dot_dimension_numbers<[2], [1], [1], [2], [0, 0, 0, 1, 1, 2], [0], [0]>} : vector<4x64x4xbf16>, vector<4x4x64xbf16>, vector<4x64x64xf32> -> vector<4x64x64xf32>
    "tpu.trace_stop"() : () -> ()
    %cst_32 = arith.constant dense<0xFF800000> : vector<4x64xf32>
    %91 = vector.multi_reduction <maximumf>, %90, %cst_32 [2] : vector<4x64x64xf32> to vector<4x64xf32>
    %92 = vector.shape_cast %91 : vector<4x64xf32> to vector<4x64x1xf32>
    %93 = vector.broadcast %92 : vector<4x64x1xf32> to vector<4x64x64xf32>
    %94 = arith.subf %90, %93 : vector<4x64x64xf32>
    %95 = math.exp %94 : vector<4x64x64xf32>
    %cst_33 = arith.constant dense<0.000000e+00> : vector<4x64xf32>
    %96 = vector.multi_reduction <add>, %95, %cst_33 [2] : vector<4x64x64xf32> to vector<4x64xf32>
    %97 = vector.shape_cast %96 : vector<4x64xf32> to vector<4x64x1xf32>
    %98 = tpu.reciprocal %97 {approx = true} : vector<4x64x1xf32> -> vector<4x64x1xf32>
    %99 = vector.broadcast %98 : vector<4x64x1xf32> to vector<4x64x64xf32>
    %100 = arith.mulf %95, %99 : vector<4x64x64xf32>
    %101 = arith.truncf %100 : vector<4x64x64xf32> to vector<4x64x64xbf16>
    "tpu.trace_start"() <{level = 10 : i32, message = "hdk,hqk->hdq"}> : () -> ()
    %cst_34 = arith.constant dense<0.000000e+00> : vector<4x4x64xf32>
    %102 = tpu.matmul %89, %101, %cst_34 {dimension_numbers = #tpu.dot_dimension_numbers<[2], [2], [1], [1], [0, 0, 0, 1, 1, 1], [0], [0]>} : vector<4x4x64xbf16>, vector<4x64x64xbf16>, vector<4x4x64xf32> -> vector<4x4x64xf32>
    "tpu.trace_stop"() : () -> ()
    %103 = vector.shape_cast %102 : vector<4x4x64xf32> to vector<16x64xf32>
    %104 = arith.truncf %103 : vector<16x64xf32> to vector<16x64xbf16>
    %cst_35 = arith.constant dense<0.000000e+00> : vector<16x64xf32>
    %105 = tpu.matmul %2, %104, %cst_35 {dimension_numbers = #tpu.dot_dimension_numbers<[1], [0], [0], [1], [0, 0, 1, 1], [], []>} : vector<16x16xbf16>, vector<16x64xbf16>, vector<16x64xf32> -> vector<16x64xf32>
    %106 = arith.addf %59, %105 : vector<16x64xf32>
    %107 = vector.broadcast %3 : vector<16x1xf32> to vector<16x64xf32>
    %108 = arith.addf %106, %107 : vector<16x64xf32>
    %c1_36 = arith.constant 1 : index
    %c0_37 = arith.constant 0 : index
    %c0_38 = arith.constant 0 : index
    %109 = vector.load %arg6[%c1_36, %c0_37, %c0_38] : memref<2x16x64xf32, #tpu.memory_space<vmem>>, vector<1x16x64xf32>
    %110 = vector.shape_cast %109 : vector<1x16x64xf32> to vector<16x64xf32>
    %111 = vector.shape_cast %108 : vector<16x64xf32> to vector<1x16x64xf32>
    tpu.vector_store %arg6[%c1_36, %c0_37, %c0_38], %111 {strides = array<i32>} : memref<2x16x64xf32, #tpu.memory_space<vmem>>, vector<1x16x64xf32>,
    return
  }
  func.func @transform_0(%arg0: i32) -> (i32, i32, i32) {
    %c0_i32 = arith.constant 0 : i32
    %c0_i32_0 = arith.constant 0 : i32
    %c0_i32_1 = arith.constant 0 : i32
    return %arg0, %c0_i32, %c0_i32_0 : i32, i32, i32
  }
  func.func @transform_1(%arg0: i32) -> (i32, i32) {
    %c0_i32 = arith.constant 0 : i32
    %c0_i32_0 = arith.constant 0 : i32
    %c0_i32_1 = arith.constant 0 : i32
    return %c0_i32, %c0_i32_0 : i32, i32
  }
  func.func @transform_2(%arg0: i32) -> (i32, i32) {
    %c0_i32 = arith.constant 0 : i32
    %c0_i32_0 = arith.constant 0 : i32
    %c0_i32_1 = arith.constant 0 : i32
    return %c0_i32, %c0_i32_0 : i32, i32
  }
  func.func @transform_3(%arg0: i32) -> (i32, i32) {
    %c0_i32 = arith.constant 0 : i32
    %c0_i32_0 = arith.constant 0 : i32
    %c0_i32_1 = arith.constant 0 : i32
    return %c0_i32, %c0_i32_0 : i32, i32
  }
  func.func @transform_4(%arg0: i32) -> (i32, i32) {
    %c0_i32 = arith.constant 0 : i32
    %c0_i32_0 = arith.constant 0 : i32
    %c0_i32_1 = arith.constant 0 : i32
    return %c0_i32, %c0_i32_0 : i32, i32
  }
  func.func @transform_5(%arg0: i32) -> (i32, i32, i32) {
    %c0_i32 = arith.constant 0 : i32
    %c0_i32_0 = arith.constant 0 : i32
    %c0_i32_1 = arith.constant 0 : i32
    return %arg0, %c0_i32, %c0_i32_0 : i32, i32, i32
  }
}

</mosaic_0001>

<bundles_post_ra>
// kernel: self_attention_2d.1
= control target key start
LH: loop header
LB: loop body
LE: loop exit
PB: predicated region body
PF: predicated region fallthrough
CT: control target
= control target key end

     0   :  { %vm39_vm0 = vcmask 523264   ;;  %v2878_v2 = vmov 16.0   ;;  %v3908_v33 = vmov 0   ;;  %vm130_vm5 = vcmask 130048   ;;  %s3902_s0 = inlined_call_operand.vmem [shape: f32[2,16,64], index: 0, kind: input, shape index: {}]   ;;  %s3903_s2 = inlined_call_operand.vmem [shape: f32[48,1], index: 2, kind: input, shape index: {}]   ;;  %s3904_s1 = inlined_call_operand.vmem [shape: bf16[48,16], index: 1, kind: input, shape index: {}]   ;;  %s3905_s3 = inlined_call_operand.vmem [shape: bf16[16,16], index: 3, kind: input, shape index: {}]   ;;  %s3906_s4 = inlined_call_operand.vmem [shape: f32[16,1], index: 4, kind: input, shape index: {}]   ;;  %s3907_s5 = inlined_call_operand.vmem [shape: f32[2,16,64], index: 5, kind: output, shape index: {}]  }
   0x1   :  { %v37_v0 = vld [vmem:[%s3902_s0] sm:$0xff]  ;;  %v38_v1 = vld [vmem:[%s3902_s0 + $0x8] sm:$0xff]  ;;  %2608 = vrcp.f32 %v2878_v2  ;;  %2437 = vset.pattern.permute.xlu0 %v3908_v33  ;;  %2438 = vset.pattern.permute.xlu1 %v3908_v33  ;;  %v30_v49 = vld [vmem:[%s3903_s2 + $0x18] sm:$0xff]  ;;  %vm383_vm6 = vcmask 1041408   ;;  %vm370_vm7 = vcmask 31744  }
   0x2   :  { %v40_v3 = vsel %vm39_vm0, %v37_v0, 0.0  ;;  %v41_v4 = vsel %vm39_vm0, %v38_v1, 0.0  ;;  %v28_v31 = vld [vmem:[%s3903_s2 + $0x8] sm:$0xff]  ;;  %v27_v36 = vld [vmem:[%s3903_s2] sm:$0xff]  ;;  %102 = vperm.xlu1 %2438, %v30_v49   ;;  %v29_v50 = vld [vmem:[%s3903_s2 + $0x10] sm:$0xff] }
   0x3   :  { %v42_v5 = vadd.f32 %v41_v4, %v40_v3  ;;  %92 = vperm.xlu0 %2437, %v28_v31   ;;  %v2430_v47 = vld [vmem:[%s3904_s1] sm:$0xff]  ;;  %v2431_v48 = vld [vmem:[%s3904_s1 + $0x8] sm:$0xff] }
   0x5   :  { %v43_v6 = vrot.slane %v42_v5, 4 }
   0x7   :  { %v2609_v7 = vpop.eup %2608  ;;  %v44_v8 = vadd.f32 %v43_v6, %v42_v5 }
   0x8   :  { %v50_v9 = vmul.f32 16.0, %v2609_v7  ;;  %vm54_vm1 = vweird.f32 %v2609_v7 }
   0x9   :  { %v45_v10 = vrot.slane %v44_v8, 2 }
   0xa   :  { %v51_v11 = vsub.f32 1.0, %v50_v9  ;;  %97 = vperm.xlu1 %2438, %v29_v50  }
   0xb   :  { %v46_v12 = vadd.f32 %v45_v10, %v44_v8  ;;  %87 = vperm.xlu0 %2437, %v27_v36  }
   0xc   :  { %v52_v13 = vmul.f32 %v2609_v7, %v51_v11 }
   0xd   :  { %v47_v14 = vrot.slane %v46_v12, 1 }
   0xe   :  { %v53_v15 = vadd.f32 %v2609_v7, %v52_v13 }
   0xf   :  { %v48_v16 = vadd.f32 %v47_v14, %v46_v12 }
  0x10   :  { %v2918_v17 = vsel %vm54_vm1, %v2609_v7, %v53_v15 }
  0x11   :  { %v56_v18 = vmul.f32 %v2918_v17, %v48_v16 }
  0x13   :  { %v57_v19 = vsub.f32 %v37_v0, %v56_v18  ;;  %v58_v20 = vsub.f32 %v38_v1, %v56_v18 }
  0x15   :  { %v59_v21 = vmul.f32 %v57_v19, %v57_v19  ;;  %v60_v22 = vmul.f32 %v58_v20, %v58_v20 }
  0x17   :  { %v61_v23 = vsel %vm39_vm0, %v59_v21, 0.0  ;;  %v62_v24 = vsel %vm39_vm0, %v60_v22, 0.0 }
  0x18   :  { %v63_v25 = vadd.f32 %v62_v24, %v61_v23 }
  0x1a   :  { %v64_v26 = vrot.slane %v63_v25, 4 }
  0x1c   :  { %v65_v27 = vadd.f32 %v64_v26, %v63_v25 }
  0x1e   :  { %v66_v28 = vrot.slane %v65_v27, 2 }
  0x20   :  { %v67_v29 = vadd.f32 %v66_v28, %v65_v27 }
  0x22   :  { %v68_v30 = vrot.slane %v67_v29, 1 }
  0x24   :  { %v69_v32 = vadd.f32 %v68_v30, %v67_v29 }
  0x26   :  { %v70_v34 = vmul.f32 %v69_v32, %v2918_v17 }
  0x28   :  { %v71_v35 = vadd.f32 1e-05, %v70_v34 }
  0x2a   :  { %2610 = vrsqrt.f32 %v71_v35  ;;  %vm78_vm2 = vweird.f32 %v71_v35 }
  0x30   :  { %v2611_v37 = vpop.eup %2610 }
  0x31   :  { %v73_v38 = vmul.f32 %v2611_v37, %v71_v35  ;;  %vm79_vm3 = vweird.f32 %v2611_v37 }
  0x32   :  { %vm80_vm4 = vmor %vm78_vm2, %vm79_vm3 }
  0x33   :  { %v74_v39 = vmul.f32 %v2611_v37, %v73_v38 }
  0x35   :  { %v75_v40 = vmul.f32 0.5, %v74_v39 }
  0x37   :  { %v76_v41 = vsub.f32 1.5, %v75_v40 }
  0x39   :  { %v77_v42 = vmul.f32 %v2611_v37, %v76_v41 }
  0x3b   :  { %v81_v43 = vsel %vm80_vm4, %v2611_v37, %v77_v42 }
  0x3c   :  { %v82_v44 = vmul.f32 %v81_v43, %v57_v19  ;;  %v83_v45 = vmul.f32 %v81_v43, %v58_v20 }
  0x3e   :  { %v84_v46 = vpack.c.bf16 %v83_v45, %v82_v44 }
  0x40   :  { %147 = vmatpush.bf16.msra.mxu0 %v84_v46 }
  0x43   :  { %2374 = vmatmul.msk.bf16.vlgmr.msra.gmra.mxu0 %vm130_vm5, %v2430_v47  ;;  %v2432_v47 = vld [vmem:[%s3904_s1 + $0x10] sm:$0xff] }
  0x53   :  { %2375 = vmatmul.msk.bf16.gmra.mxu0 %vm130_vm5, %v2431_v48 }
  0x63   :  { %2376 = vmatmul.msk.bf16.gmra.mxu0 %vm130_vm5, %v2432_v47 }
  0x74   :  { %v2952_v61 = vpop.permute.xlu1 %102 }
  0x75   :  { %v2946_v51 = vpop.permute.xlu0 %92  ;;  %3916 = vst [vmem:[#allocation4_spill] sm:$0xff] %v2952_v61 }
  0x76   :  { %3914 = vst [vmem:[#allocation2_spill] sm:$0xff] %v2946_v51 }
  0x7c   :  { %v2954_v63 = vpop.permute.xlu1 %97 }
  0x7d   :  { %v2948_v53 = vpop.permute.xlu0 %87  ;;  %3917 = vst [vmem:[#allocation5_spill] sm:$0xff] %v2954_v63 }
  0x7e   :  { %3915 = vst [vmem:[#allocation3_spill] sm:$0xff] %v2948_v53 }
  0xc0   :  { %v149_v52 = vpop.f32.mrf.mxu0 }
  0xc1   :  { %v150_v55 = vadd.f32 %v149_v52, %v2948_v53 }
  0xc3   :  { %v166_v59 = vrot.slane %v150_v55, 4 }
  0xc8   :  { %v151_v54 = vpop.f32.mrf.mxu0 }
  0xc9   :  { %v152_v56 = vadd.f32 %v151_v54, %v2946_v51 }
  0xcb   :  { %v2439_v57 = vpack.i.bf16 %v150_v55, %v152_v56  ;;  %v167_v58 = vrot.slane %v152_v56, 4 }
  0xcd   :  { %2440 = vxpose.xlu2.b32.start.end [1/1] (short) (narrow) %v2439_v57, 64  ;;  %v2481_v60 = vpack.i.bf16 %v167_v58, %v166_v59 }
  0xd0   :  { %v154_v62 = vpop.f32.mrf.mxu0 }
  0xd1   :  { %v155_v1 = vadd.f32 %v154_v62, %v2954_v63 }
  0xd3   :  { %v336_v3 = vpack.c.bf16 %v155_v1, %v155_v1  ;;  %v332_v9 = vrot.slane %v155_v1, 4 }
  0xd5   :  { %v385_v5 = vsel %vm383_vm6, %v336_v3, 0  ;;  %v337_v13 = vpack.c.bf16 %v332_v9, %v332_v9 }
  0xd6   :  { %394 = vmatpush.bf16.msra.mxu1 %v385_v5 }
  0xd7   :  { %v449_v15 = vsel %vm383_vm6, %v337_v13, 0 }
  0xd8   :  { %v156_v0 = vpop.f32.mrf.mxu0  ;;  %458 = vmatpush.bf16.msra.mxu2 %v449_v15 }
  0xd9   :  { %v157_v2 = vadd.f32 %v156_v0, %v2952_v61 }
  0xdb   :  { %v338_v4 = vpack.c.bf16 %v157_v2, %v157_v2  ;;  %v333_v7 = vrot.slane %v157_v2, 4 }
  0xdd   :  { %v513_v6 = vsel %vm383_vm6, %v338_v4, 0  ;;  %v339_v10 = vpack.c.bf16 %v333_v7, %v333_v7 }
  0xde   :  { %522 = vmatpush.bf16.msra.mxu3 %v513_v6 }
  0xdf   :  { %v577_v14 = vsel %vm383_vm6, %v339_v10, 0 }
  0xe0   :  { %586 = vmatpush.bf16.msrb.mxu0 %v577_v14 }
 0x10d   :  { %2482 = vxpose.xlu2.b32.start.end [1/1] (short) (narrow) %v2481_v60, 64 }
 0x166   :  { %v2441_v8 = vpop.trf.xlu2 }
 0x167   :  { %v2445_v11 = vunpack.i.h.bf16 %v2441_v8  ;;  %v2442_v12 = vunpack.i.l.bf16 %v2441_v8 }
 0x169   :  { %v298_v16 = vpack.c.bf16 %v2445_v11, %v2445_v11  ;;  %v314_v18 = vpack.c.bf16 %v2442_v12, %v2442_v12 }
 0x16b   :  { %v358_v24 = vunpack.c.l.b16 %v298_v16  ;;  %v488_v26 = vunpack.c.l.b16 %v314_v18 }
 0x16e   :  { %v2446_v19 = vpop.trf.xlu2 }
 0x16f   :  { %v2450_v20 = vunpack.i.h.bf16 %v2446_v19  ;;  %v2447_v21 = vunpack.i.l.bf16 %v2446_v19 }
 0x171   :  { %v299_v22 = vpack.c.bf16 %v2450_v20, %v2450_v20  ;;  %v315_v23 = vpack.c.bf16 %v2447_v21, %v2447_v21 }
 0x173   :  { %v359_v25 = vunpack.c.l.b16 %v299_v22  ;;  %v489_v27 = vunpack.c.l.b16 %v315_v23 }
 0x175   :  { %v366_v28 = vpack.c.b16 %v359_v25, %v358_v24  ;;  %v496_v29 = vpack.c.b16 %v489_v27, %v488_v26 }
 0x176   :  { %v2451_v30 = vpop.trf.xlu2 }
 0x177   :  { %2377 = vmatmul.msk.bf16.vlgmr.msra.gmra.mxu1 %vm370_vm7, %v366_v28  ;;  %2385 = vmatmul.msk.bf16.vlgmr.msra.gmra.mxu3 %vm370_vm7, %v496_v29  ;;  %v2455_v31 = vunpack.i.h.bf16 %v2451_v30  ;;  %v2452_v32 = vunpack.i.l.bf16 %v2451_v30 }
 0x179   :  { %v300_v34 = vpack.c.bf16 %v2455_v31, %v2455_v31  ;;  %v316_v35 = vpack.c.bf16 %v2452_v32, %v2452_v32 }
 0x17b   :  { %v360_v41 = vunpack.c.l.b16 %v300_v34  ;;  %v490_v43 = vunpack.c.l.b16 %v316_v35 }
 0x17e   :  { %v2456_v36 = vpop.trf.xlu2 }
 0x17f   :  { %v2460_v37 = vunpack.i.h.bf16 %v2456_v36  ;;  %v2457_v38 = vunpack.i.l.bf16 %v2456_v36 }
 0x181   :  { %v301_v39 = vpack.c.bf16 %v2460_v37, %v2460_v37  ;;  %v317_v40 = vpack.c.bf16 %v2457_v38, %v2457_v38 }
 0x183   :  { %v361_v42 = vunpack.c.l.b16 %v301_v39  ;;  %v491_v44 = vunpack.c.l.b16 %v317_v40 }
 0x185   :  { %v367_v45 = vpack.c.b16 %v361_v42, %v360_v41  ;;  %v497_v46 = vpack.c.b16 %v491_v44, %v490_v43 }
 0x186   :  { %v2461_v48 = vpop.trf.xlu2 }
 0x187   :  { %2378 = vmatmul.msk.bf16.gmra.mxu1 %vm370_vm7, %v367_v45  ;;  %2386 = vmatmul.msk.bf16.gmra.mxu3 %vm370_vm7, %v497_v46  ;;  %v2465_v49 = vunpack.i.h.bf16 %v2461_v48  ;;  %v2462_v50 = vunpack.i.l.bf16 %v2461_v48 }
 0x189   :  { %v302_v52 = vpack.c.bf16 %v2465_v49, %v2465_v49  ;;  %v318_v54 = vpack.c.bf16 %v2462_v50, %v2462_v50 }
 0x18b   :  { %v362_v60 = vunpack.c.l.b16 %v302_v52  ;;  %v492_v0 = vunpack.c.l.b16 %v318_v54 }
 0x18e   :  { %v2466_v55 = vpop.trf.xlu2 }
 0x18f   :  { %v2470_v56 = vunpack.i.h.bf16 %v2466_v55  ;;  %v2467_v57 = vunpack.i.l.bf16 %v2466_v55 }
 0x191   :  { %v303_v58 = vpack.c.bf16 %v2470_v56, %v2470_v56  ;;  %v319_v59 = vpack.c.bf16 %v2467_v57, %v2467_v57 }
 0x193   :  { %v363_v62 = vunpack.c.l.b16 %v303_v58  ;;  %v493_v1 = vunpack.c.l.b16 %v319_v59 }
 0x195   :  { %v368_v2 = vpack.c.b16 %v363_v62, %v362_v60  ;;  %v498_v3 = vpack.c.b16 %v493_v1, %v492_v0 }
 0x196   :  { %v2471_v4 = vpop.trf.xlu2 }
 0x197   :  { %2379 = vmatmul.msk.bf16.gmra.mxu1 %vm370_vm7, %v368_v2  ;;  %2387 = vmatmul.msk.bf16.gmra.mxu3 %vm370_vm7, %v498_v3  ;;  %v2475_v5 = vunpack.i.h.bf16 %v2471_v4  ;;  %v2472_v6 = vunpack.i.l.bf16 %v2471_v4 }
 0x199   :  { %v304_v7 = vpack.c.bf16 %v2475_v5, %v2475_v5  ;;  %v320_v8 = vpack.c.bf16 %v2472_v6, %v2472_v6 }
 0x19b   :  { %v364_v14 = vunpack.c.l.b16 %v304_v7  ;;  %v494_v16 = vunpack.c.l.b16 %v320_v8 }
 0x19e   :  { %v2476_v9 = vpop.trf.xlu2 }
 0x19f   :  { %v2480_v10 = vunpack.i.h.bf16 %v2476_v9  ;;  %v2477_v11 = vunpack.i.l.bf16 %v2476_v9 }
 0x1a1   :  { %v305_v12 = vpack.c.bf16 %v2480_v10, %v2480_v10  ;;  %v321_v13 = vpack.c.bf16 %v2477_v11, %v2477_v11 }
 0x1a3   :  { %v365_v15 = vunpack.c.l.b16 %v305_v12  ;;  %v495_v18 = vunpack.c.l.b16 %v321_v13 }
 0x1a5   :  { %v369_v19 = vpack.c.b16 %v365_v15, %v364_v14  ;;  %v499_v20 = vpack.c.b16 %v495_v18, %v494_v16 }
 0x1a6   :  { %v2483_v21 = vpop.trf.xlu2 }
 0x1a7   :  { %2380 = vmatmul.msk.bf16.gmra.mxu1 %vm370_vm7, %v369_v19  ;;  %2388 = vmatmul.msk.bf16.gmra.mxu3 %vm370_vm7, %v499_v20  ;;  %v2487_v22 = vunpack.i.h.bf16 %v2483_v21  ;;  %v2484_v23 = vunpack.i.l.bf16 %v2483_v21 }
 0x1a9   :  { %v322_v24 = vpack.c.bf16 %v2487_v22, %v2487_v22  ;;  %v306_v25 = vpack.c.bf16 %v2484_v23, %v2484_v23 }
 0x1ab   :  { %v552_v31 = vunpack.c.l.b16 %v322_v24  ;;  %v424_v34 = vunpack.c.l.b16 %v306_v25 }
 0x1ae   :  { %v2488_v26 = vpop.trf.xlu2 }
 0x1af   :  { %v2492_v27 = vunpack.i.h.bf16 %v2488_v26  ;;  %v2489_v28 = vunpack.i.l.bf16 %v2488_v26 }
 0x1b1   :  { %v323_v29 = vpack.c.bf16 %v2492_v27, %v2492_v27  ;;  %v307_v30 = vpack.c.bf16 %v2489_v28, %v2489_v28 }
 0x1b3   :  { %v553_v32 = vunpack.c.l.b16 %v323_v29  ;;  %v425_v35 = vunpack.c.l.b16 %v307_v30 }
 0x1b5   :  { %v432_v36 = vpack.c.b16 %v425_v35, %v424_v34  ;;  %v560_v37 = vpack.c.b16 %v553_v32, %v552_v31 }
 0x1b6   :  { %v2493_v38 = vpop.trf.xlu2 }
 0x1b7   :  { %2381 = vmatmul.msk.bf16.vlgmr.msra.gmra.mxu2 %vm370_vm7, %v432_v36  ;;  %2389 = vmatmul.msk.bf16.vlgmr.msrb.gmra.mxu0 %vm370_vm7, %v560_v37  ;;  %v2497_v39 = vunpack.i.h.bf16 %v2493_v38  ;;  %v2494_v40 = vunpack.i.l.bf16 %v2493_v38 }
 0x1b9   :  { %v324_v41 = vpack.c.bf16 %v2497_v39, %v2497_v39  ;;  %v308_v42 = vpack.c.bf16 %v2494_v40, %v2494_v40 }
 0x1bb   :  { %v426_v48 = vunpack.c.l.b16 %v308_v42  ;;  %v554_v50 = vunpack.c.l.b16 %v324_v41 }
 0x1be   :  { %v2498_v43 = vpop.trf.xlu2 }
 0x1bf   :  { %v2502_v44 = vunpack.i.h.bf16 %v2498_v43  ;;  %v2499_v45 = vunpack.i.l.bf16 %v2498_v43 }
 0x1c1   :  { %v325_v46 = vpack.c.bf16 %v2502_v44, %v2502_v44  ;;  %v309_v47 = vpack.c.bf16 %v2499_v45, %v2499_v45  ;;  %v3014_v44 = vpop.f32.mrf.mxu0 }
 0x1c3   :  { %v427_v49 = vunpack.c.l.b16 %v309_v47  ;;  %v555_v52 = vunpack.c.l.b16 %v325_v46 }
 0x1c5   :  { %v433_v54 = vpack.c.b16 %v427_v49, %v426_v48  ;;  %v561_v55 = vpack.c.b16 %v555_v52, %v554_v50 }
 0x1c6   :  { %v2503_v56 = vpop.trf.xlu2 }
 0x1c7   :  { %2382 = vmatmul.msk.bf16.gmra.mxu2 %vm370_vm7, %v433_v54  ;;  %2390 = vmatmul.msk.bf16.gmra.mxu0 %vm370_vm7, %v561_v55  ;;  %v2507_v57 = vunpack.i.h.bf16 %v2503_v56  ;;  %v2504_v58 = vunpack.i.l.bf16 %v2503_v56 }
 0x1c9   :  { %v326_v59 = vpack.c.bf16 %v2507_v57, %v2507_v57  ;;  %v310_v60 = vpack.c.bf16 %v2504_v58, %v2504_v58  ;;  %v3016_v45 = vpop.f32.mrf.mxu0 }
 0x1cb   :  { %v428_v4 = vunpack.c.l.b16 %v310_v60  ;;  %v556_v5 = vunpack.c.l.b16 %v326_v59 }
 0x1ce   :  { %v2508_v62 = vpop.trf.xlu2 }
 0x1cf   :  { %v2512_v0 = vunpack.i.h.bf16 %v2508_v62  ;;  %v2509_v1 = vunpack.i.l.bf16 %v2508_v62 }
 0x1d1   :  { %v327_v2 = vpack.c.bf16 %v2512_v0, %v2512_v0  ;;  %v311_v3 = vpack.c.bf16 %v2509_v1, %v2509_v1 }
 0x1d3   :  { %v429_v6 = vunpack.c.l.b16 %v311_v3  ;;  %v557_v7 = vunpack.c.l.b16 %v327_v2 }
 0x1d5   :  { %v434_v8 = vpack.c.b16 %v429_v6, %v428_v4  ;;  %v562_v9 = vpack.c.b16 %v557_v7, %v556_v5 }
 0x1d6   :  { %v2513_v10 = vpop.trf.xlu2 }
 0x1d7   :  { %2383 = vmatmul.msk.bf16.gmra.mxu2 %vm370_vm7, %v434_v8  ;;  %2391 = vmatmul.msk.bf16.gmra.mxu0 %vm370_vm7, %v562_v9  ;;  %v2517_v11 = vunpack.i.h.bf16 %v2513_v10  ;;  %v2514_v12 = vunpack.i.l.bf16 %v2513_v10 }
 0x1d9   :  { %v328_v13 = vpack.c.bf16 %v2517_v11, %v2517_v11  ;;  %v312_v14 = vpack.c.bf16 %v2514_v12, %v2514_v12 }
 0x1db   :  { %v430_v21 = vunpack.c.l.b16 %v312_v14  ;;  %v558_v22 = vunpack.c.l.b16 %v328_v13 }
 0x1de   :  { %v2518_v15 = vpop.trf.xlu2 }
 0x1df   :  { %v2522_v16 = vunpack.i.h.bf16 %v2518_v15  ;;  %v2519_v18 = vunpack.i.l.bf16 %v2518_v15 }
 0x1e1   :  { %v329_v19 = vpack.c.bf16 %v2522_v16, %v2522_v16  ;;  %v313_v20 = vpack.c.bf16 %v2519_v18, %v2519_v18 }
 0x1e3   :  { %v431_v23 = vunpack.c.l.b16 %v313_v20  ;;  %v559_v24 = vunpack.c.l.b16 %v329_v19 }
 0x1e5   :  { %v435_v25 = vpack.c.b16 %v431_v23, %v430_v21  ;;  %v563_v26 = vpack.c.b16 %v559_v24, %v558_v22 }
 0x1e7   :  { %2384 = vmatmul.msk.bf16.gmra.mxu2 %vm370_vm7, %v435_v25  ;;  %2392 = vmatmul.msk.bf16.gmra.mxu0 %vm370_vm7, %v563_v26 }
 0x1f4   :  { %v2982_v27 = vpop.f32.mrf.mxu1 }
 0x1f5   :  { %v608_v43 = vsel %vm39_vm0, %v2982_v27, -inf }
 0x1fa   :  { %v2984_v28 = vpop.f32.mrf.mxu3 }
 0x1fb   :  { %v656_v41 = vsel %vm39_vm0, %v2984_v28, -inf }
 0x1fc   :  { %v2986_v29 = vpop.f32.mrf.mxu1 }
 0x1fd   :  { %v611_v42 = vsel %vm39_vm0, %v2986_v29, -inf }
 0x202   :  { %v2988_v30 = vpop.f32.mrf.mxu3 }
 0x203   :  { %v659_v39 = vsel %vm39_vm0, %v2988_v30, -inf }
 0x204   :  { %v2990_v31 = vpop.f32.mrf.mxu1 }
 0x205   :  { %v614_v37 = vsel %vm39_vm0, %v2990_v31, -inf }
 0x20a   :  { %v2992_v32 = vpop.f32.mrf.mxu3 }
 0x20b   :  { %v662_v34 = vsel %vm39_vm0, %v2992_v32, -inf }
 0x20c   :  { %v2996_v35 = vpop.f32.mrf.mxu1  ;;  %663 = vmax.xlane.f32.xlu1 %v662_v34 }
 0x20d   :  { %v617_v36 = vsel %vm39_vm0, %v2996_v35, -inf }
 0x20e   :  { %618 = vmax.xlane.f32.xlu0 %v617_v36 }
 0x212   :  { %v3048_v1 = vpop.f32.mrf.mxu3 }
 0x213   :  { %v665_v3 = vsel %vm39_vm0, %v3048_v1, -inf }
 0x214   :  { %v3002_v38 = vpop.f32.mrf.mxu1  ;;  %615 = vmax.xlane.f32.xlu1 %v614_v37 }
 0x215   :  { %v620_v40 = vsel %vm39_vm0, %v3002_v38, -inf }
 0x216   :  { %660 = vmax.xlane.f32.xlu0 %v659_v39  ;;  %621 = vmax.xlane.f32.xlu2 %v620_v40 }
 0x21a   :  { %v3062_v8 = vpop.f32.mrf.mxu3 }
 0x21b   :  { %v668_v10 = vsel %vm39_vm0, %v3062_v8, -inf }
 0x21c   :  { %657 = vmax.xlane.f32.xlu1 %v656_v41  ;;  %v3056_v5 = vpop.f32.mrf.mxu1 }
 0x21d   :  { %v623_v7 = vsel %vm39_vm0, %v3056_v5, -inf }
 0x21e   :  { %612 = vmax.xlane.f32.xlu0 %v611_v42 }
 0x222   :  { %v3072_v13 = vpop.f32.mrf.mxu3 }
 0x223   :  { %v671_v15 = vsel %vm39_vm0, %v3072_v13, -inf }
 0x224   :  { %609 = vmax.xlane.f32.xlu1 %v608_v43  ;;  %v3070_v12 = vpop.f32.mrf.mxu1 }
 0x225   :  { %v626_v14 = vsel %vm39_vm0, %v3070_v12, -inf }
 0x22a   :  { %v3096_v36 = vpop.f32.mrf.mxu3 }
 0x22b   :  { %v674_v42 = vsel %vm39_vm0, %v3096_v36, -inf }
 0x22c   :  { %v3078_v18 = vpop.f32.mrf.mxu1 }
 0x22d   :  { %v629_v20 = vsel %vm39_vm0, %v3078_v18, -inf }
 0x234   :  { %v3018_v46 = vpop.f32.mrf.mxu0 }
 0x235   :  { %v680_v2 = vsel %vm39_vm0, %v3018_v46, -inf }
 0x23a   :  { %v3020_v47 = vpop.f32.mrf.mxu2 }
 0x23b   :  { %v632_v62 = vsel %vm39_vm0, %v3020_v47, -inf }
 0x23c   :  { %v3026_v50 = vpop.f32.mrf.mxu0 }
 0x23d   :  { %v683_v54 = vsel %vm39_vm0, %v3026_v50, -inf }
 0x242   :  { %v3022_v48 = vpop.f32.mrf.mxu2 }
 0x243   :  { %v635_v49 = vsel %vm39_vm0, %v3022_v48, -inf }
 0x244   :  { %636 = vmax.xlane.f32.xlu0 %v635_v49  ;;  %v3034_v56 = vpop.f32.mrf.mxu0 }
 0x245   :  { %v686_v58 = vsel %vm39_vm0, %v3034_v56, -inf }
 0x24a   :  { %v3028_v52 = vpop.f32.mrf.mxu2 }
 0x24b   :  { %v638_v55 = vsel %vm39_vm0, %v3028_v52, -inf }
 0x24c   :  { %684 = vmax.xlane.f32.xlu0 %v683_v54  ;;  %639 = vmax.xlane.f32.xlu1 %v638_v55  ;;  %v3042_v60 = vpop.f32.mrf.mxu0  ;;  %v3105_v54 = vpop.f32.mrf.mxu3 }
 0x24d   :  { %v689_v0 = vsel %vm39_vm0, %v3042_v60, -inf }
 0x252   :  { %v3036_v57 = vpop.f32.mrf.mxu2 }
 0x253   :  { %v641_v59 = vsel %vm39_vm0, %v3036_v57, -inf }
 0x254   :  { %687 = vmax.xlane.f32.xlu1 %v686_v58  ;;  %642 = vmax.xlane.f32.xlu0 %v641_v59  ;;  %v3064_v9 = vpop.f32.mrf.mxu0 }
 0x255   :  { %v692_v11 = vsel %vm39_vm0, %v3064_v9, -inf }
 0x25a   :  { %v3054_v4 = vpop.f32.mrf.mxu2 }
 0x25b   :  { %v644_v6 = vsel %vm39_vm0, %v3054_v4, -inf }
 0x25c   :  { %633 = vmax.xlane.f32.xlu1 %v632_v62  ;;  %690 = vmax.xlane.f32.xlu0 %v689_v0  ;;  %v3088_v24 = vpop.f32.mrf.mxu0 }
 0x25d   :  { %v695_v34 = vsel %vm39_vm0, %v3088_v24, -inf }
 0x262   :  { %v3080_v19 = vpop.f32.mrf.mxu2 }
 0x263   :  { %v647_v21 = vsel %vm39_vm0, %v3080_v19, -inf }
 0x264   :  { %681 = vmax.xlane.f32.xlu1 %v680_v2  ;;  %666 = vmax.xlane.f32.xlu0 %v665_v3  ;;  %v3098_v40 = vpop.f32.mrf.mxu0  ;;  %v677_v3 = vsel %vm39_vm0, %v3105_v54, -inf }
 0x265   :  { %v698_v43 = vsel %vm39_vm0, %v3098_v40, -inf }
 0x26a   :  { %v3090_v25 = vpop.f32.mrf.mxu2 }
 0x26b   :  { %v650_v26 = vsel %vm39_vm0, %v3090_v25, -inf }
 0x26c   :  { %624 = vmax.xlane.f32.xlu0 %v623_v7  ;;  %645 = vmax.xlane.f32.xlu1 %v644_v6 }
 0x272   :  { %v3107_v58 = vpop.f32.mrf.mxu2 }
 0x273   :  { %v653_v6 = vsel %vm39_vm0, %v3107_v58, -inf }
 0x274   :  { %669 = vmax.xlane.f32.xlu0 %v668_v10  ;;  %693 = vmax.xlane.f32.xlu1 %v692_v11 }
 0x27c   :  { %627 = vmax.xlane.f32.xlu0 %v626_v14  ;;  %672 = vmax.xlane.f32.xlu1 %v671_v15 }
 0x27f   :  { %v664_v16 = vpop.xlane.xlu1 %663 }
 0x281   :  { %v3086_v22 = vpop.xlane.xlu0 %618 }
 0x284   :  { %630 = vmax.xlane.f32.xlu1 %v629_v20  ;;  %648 = vmax.xlane.f32.xlu0 %v647_v21 }
 0x287   :  { %v616_v23 = vpop.xlane.xlu1 %615 }
 0x288   :  { %v706_v41 = vsub.f32 %v2990_v31, %v616_v23 }
 0x289   :  { %v661_v37 = vpop.xlane.xlu0 %660 }
 0x28a   :  { %v740_v49 = vmul.f32 1.442695, %v706_v41  ;;  %v721_v31 = vsub.f32 %v2988_v30, %v661_v37  ;;  %v722_v30 = vsub.f32 %v2992_v32, %v664_v16  ;;  %v707_v37 = vsub.f32 %v2996_v35, %v3086_v22 }
 0x28c   :  { %696 = vmax.xlane.f32.xlu0 %v695_v34  ;;  %651 = vmax.xlane.f32.xlu1 %v650_v26  ;;  %2612 = vpow2.f32 %v740_v49  ;;  %v770_v7 = vmul.f32 1.442695, %v721_v31  ;;  %v772_v23 = vmul.f32 1.442695, %v722_v30  ;;  %v622_v26 = vpop.xlane.xlu2 %621 }
 0x28f   :  { %v658_v39 = vpop.xlane.xlu1 %657 }
 0x291   :  { %v613_v59 = vpop.xlane.xlu0 %612 }
 0x292   :  { %v705_v2 = vsub.f32 %v2986_v29, %v613_v59  ;;  %v3116_v11 = vpop.eup %2612  ;;  %v720_v29 = vsub.f32 %v2984_v28, %v658_v39  ;;  %v708_v28 = vsub.f32 %v3002_v38, %v622_v26 }
 0x293   :  { %v806_v20 = vsel %vm39_vm0, %v3116_v11, 0.0 }
 0x294   :  { %675 = vmax.xlane.f32.xlu0 %v674_v42  ;;  %699 = vmax.xlane.f32.xlu1 %v698_v43  ;;  %v738_v10 = vmul.f32 1.442695, %v705_v2  ;;  %v768_v34 = vmul.f32 1.442695, %v720_v29  ;;  %v744_v42 = vmul.f32 1.442695, %v708_v28 }
 0x295   :  { %v742_v43 = vmul.f32 1.442695, %v707_v37 }
 0x297   :  { %v610_v55 = vpop.xlane.xlu1 %609 }
 0x298   :  { %v704_v62 = vsub.f32 %v2982_v27, %v610_v55  ;;  %v3118_v27 = vpop.f32.mrf.mxu0 }
 0x299   :  { %v701_v21 = vsel %vm39_vm0, %v3118_v27, -inf }
 0x29a   :  { %v736_v0 = vmul.f32 1.442695, %v704_v62 }
 0x29c   :  { %2614 = vpow2.f32 %v736_v0  ;;  %678 = vmax.xlane.f32.xlu1 %v677_v3  ;;  %654 = vmax.xlane.f32.xlu0 %v653_v6 }
 0x29d   :  { %2616 = vpow2.f32 %v770_v7 }
 0x29e   :  { %2618 = vpow2.f32 %v738_v10 }
 0x29f   :  { %2620 = vpow2.f32 %v772_v23 }
 0x2a0   :  { %2622 = vpow2.f32 %v768_v34 }
 0x2a1   :  { %2624 = vpow2.f32 %v744_v42 }
 0x2a2   :  { %v3120_v14 = vpop.eup %2614  ;;  %2626 = vpow2.f32 %v742_v43 }
 0x2a3   :  { %v800_v15 = vsel %vm39_vm0, %v3120_v14, 0.0  ;;  %v3130_v32 = vpop.eup %2616 }
 0x2a4   :  { %801 = vadd.xlane.f32.xlu2 %v800_v15  ;;  %807 = vadd.xlane.f32.xlu1 %v806_v20  ;;  %v3132_v16 = vpop.eup %2618  ;;  %v851_v39 = vsel %vm39_vm0, %v3130_v32, 0.0 }
 0x2a5   :  { %702 = vmax.xlane.f32.xlu0 %v701_v21  ;;  %v803_v41 = vsel %vm39_vm0, %v3132_v16, 0.0  ;;  %v3141_v49 = vpop.eup %2620 }
 0x2a6   :  { %v3143_v55 = vpop.eup %2622  ;;  %v854_v35 = vsel %vm39_vm0, %v3141_v49, 0.0 }
 0x2a7   :  { %v848_v38 = vsel %vm39_vm0, %v3143_v55, 0.0  ;;  %v3151_v59 = vpop.eup %2624 }
 0x2a8   :  { %v3153_v62 = vpop.eup %2626  ;;  %v812_v31 = vsel %vm39_vm0, %v3151_v59, 0.0 }
 0x2a9   :  { %v809_v0 = vsel %vm39_vm0, %v3153_v62, 0.0 }
 0x2ac   :  { %852 = vadd.xlane.f32.xlu1 %v851_v39 }
 0x2ad   :  { %804 = vadd.xlane.f32.xlu0 %v803_v41 }
 0x2b4   :  { %855 = vadd.xlane.f32.xlu1 %v854_v35 }
 0x2b5   :  { %849 = vadd.xlane.f32.xlu0 %v848_v38 }
 0x2b7   :  { %v3149_v22 = vpop.xlane.xlu0 %636 }
 0x2bc   :  { %813 = vadd.xlane.f32.xlu1 %v812_v31 }
 0x2bd   :  { %810 = vadd.xlane.f32.xlu0 %v809_v0 }
 0x2bf   :  { %v3159_v2 = vpop.xlane.xlu0 %684  ;;  %v640_v3 = vpop.xlane.xlu1 %639 }
 0x2c0   :  { %v714_v6 = vsub.f32 %v3028_v52, %v640_v3 }
 0x2c2   :  { %v756_v7 = vmul.f32 1.442695, %v714_v6 }
 0x2c4   :  { %2628 = vpow2.f32 %v756_v7 }
 0x2c7   :  { %v688_v10 = vpop.xlane.xlu1 %687  ;;  %v643_v30 = vpop.xlane.xlu0 %642 }
 0x2c8   :  { %v730_v29 = vsub.f32 %v3034_v56, %v688_v10  ;;  %v715_v15 = vsub.f32 %v3036_v57, %v643_v30 }
 0x2ca   :  { %v788_v20 = vmul.f32 1.442695, %v730_v29  ;;  %v758_v21 = vmul.f32 1.442695, %v715_v15  ;;  %v3164_v23 = vpop.eup %2628 }
 0x2cb   :  { %v830_v26 = vsel %vm39_vm0, %v3164_v23, 0.0 }
 0x2cc   :  { %2630 = vpow2.f32 %v788_v20  ;;  %831 = vadd.xlane.f32.xlu0 %v830_v26 }
 0x2cd   :  { %2632 = vpow2.f32 %v758_v21 }
 0x2cf   :  { %v3168_v34 = vpop.xlane.xlu1 %633  ;;  %v3170_v52 = vpop.xlane.xlu0 %690 }
 0x2d2   :  { %v3172_v28 = vpop.eup %2630 }
 0x2d3   :  { %v3174_v37 = vpop.eup %2632  ;;  %v878_v56 = vsel %vm39_vm0, %v3172_v28, 0.0 }
 0x2d4   :  { %879 = vadd.xlane.f32.xlu2 %v878_v56  ;;  %v833_v57 = vsel %vm39_vm0, %v3174_v37, 0.0 }
 0x2d5   :  { %834 = vadd.xlane.f32.xlu1 %v833_v57 }
 0x2d7   :  { %v3180_v39 = vpop.xlane.xlu1 %681  ;;  %v667_v41 = vpop.xlane.xlu0 %666 }
 0x2d8   :  { %v723_v42 = vsub.f32 %v3048_v1, %v667_v41 }
 0x2da   :  { %v774_v43 = vmul.f32 1.442695, %v723_v42 }
 0x2dc   :  { %2634 = vpow2.f32 %v774_v43 }
 0x2df   :  { %v625_v35 = vpop.xlane.xlu0 %624  ;;  %v646_v38 = vpop.xlane.xlu1 %645 }
 0x2e0   :  { %v709_v31 = vsub.f32 %v3056_v5, %v625_v35  ;;  %v716_v0 = vsub.f32 %v3054_v4, %v646_v38 }
 0x2e2   :  { %v746_v3 = vmul.f32 1.442695, %v709_v31  ;;  %v760_v6 = vmul.f32 1.442695, %v716_v0  ;;  %v3185_v7 = vpop.eup %2634 }
 0x2e3   :  { %v857_v10 = vsel %vm39_vm0, %v3185_v7, 0.0 }
 0x2e4   :  { %2636 = vpow2.f32 %v746_v3  ;;  %858 = vadd.xlane.f32.xlu0 %v857_v10 }
 0x2e5   :  { %2638 = vpow2.f32 %v760_v6 }
 0x2e7   :  { %v670_v30 = vpop.xlane.xlu0 %669  ;;  %v694_v1 = vpop.xlane.xlu1 %693 }
 0x2e8   :  { %v732_v29 = vsub.f32 %v3064_v9, %v694_v1  ;;  %v724_v4 = vsub.f32 %v3062_v8, %v670_v30 }
 0x2ea   :  { %v3190_v15 = vpop.eup %2636  ;;  %v792_v20 = vmul.f32 1.442695, %v732_v29  ;;  %v776_v56 = vmul.f32 1.442695, %v724_v4 }
 0x2eb   :  { %v3192_v5 = vpop.eup %2638  ;;  %v815_v21 = vsel %vm39_vm0, %v3190_v15, 0.0 }
 0x2ec   :  { %v836_v26 = vsel %vm39_vm0, %v3192_v5, 0.0  ;;  %2640 = vpow2.f32 %v792_v20  ;;  %816 = vadd.xlane.f32.xlu0 %v815_v21 }
 0x2ed   :  { %837 = vadd.xlane.f32.xlu1 %v836_v26  ;;  %2642 = vpow2.f32 %v776_v56 }
 0x2ef   :  { %v628_v57 = vpop.xlane.xlu0 %627  ;;  %v673_v41 = vpop.xlane.xlu1 %672 }
 0x2f0   :  { %v725_v9 = vsub.f32 %v3072_v13, %v673_v41  ;;  %v710_v8 = vsub.f32 %v3070_v12, %v628_v57 }
 0x2f2   :  { %v778_v42 = vmul.f32 1.442695, %v725_v9  ;;  %v3200_v43 = vpop.eup %2640  ;;  %v748_v38 = vmul.f32 1.442695, %v710_v8  ;;  %v713_v9 = vsub.f32 %v3022_v48, %v3149_v22  ;;  %v729_v22 = vsub.f32 %v3026_v50, %v3159_v2 }
 0x2f3   :  { %v884_v35 = vsel %vm39_vm0, %v3200_v43, 0.0  ;;  %v3207_v10 = vpop.eup %2642 }
 0x2f4   :  { %2644 = vpow2.f32 %v778_v42  ;;  %v860_v12 = vsel %vm39_vm0, %v3207_v10, 0.0  ;;  %v754_v8 = vmul.f32 1.442695, %v713_v9 }
 0x2f5   :  { %885 = vadd.xlane.f32.xlu1 %v884_v35  ;;  %2646 = vpow2.f32 %v748_v38 }
 0x2f7   :  { %v631_v31 = vpop.xlane.xlu1 %630  ;;  %v649_v0 = vpop.xlane.xlu0 %648 }
 0x2f8   :  { %v711_v3 = vsub.f32 %v3078_v18, %v631_v31  ;;  %v717_v6 = vsub.f32 %v3080_v19, %v649_v0 }
 0x2fa   :  { %v750_v13 = vmul.f32 1.442695, %v711_v3  ;;  %v762_v30 = vmul.f32 1.442695, %v717_v6  ;;  %v3209_v1 = vpop.eup %2644 }
 0x2fb   :  { %v863_v29 = vsel %vm39_vm0, %v3209_v1, 0.0  ;;  %v3217_v21 = vpop.eup %2646 }
 0x2fc   :  { %2648 = vpow2.f32 %v750_v13  ;;  %864 = vadd.xlane.f32.xlu0 %v863_v29 }
 0x2fd   :  { %2650 = vpow2.f32 %v762_v30  ;;  %861 = vadd.xlane.f32.xlu1 %v860_v12 }
 0x2ff   :  { %v697_v18 = vpop.xlane.xlu0 %696  ;;  %v652_v20 = vpop.xlane.xlu1 %651 }
 0x300   :  { %v733_v19 = vsub.f32 %v3088_v24, %v697_v18  ;;  %v718_v4 = vsub.f32 %v3090_v25, %v652_v20  ;;  %v818_v25 = vsel %vm39_vm0, %v3217_v21, 0.0 }
 0x302   :  { %v3219_v26 = vpop.eup %2648  ;;  %v794_v56 = vmul.f32 1.442695, %v733_v19  ;;  %v764_v57 = vmul.f32 1.442695, %v718_v4  ;;  %v712_v19 = vsub.f32 %v3020_v47, %v3168_v34  ;;  %v728_v34 = vsub.f32 %v3018_v46, %v3180_v39 }
 0x303   :  { %v3221_v41 = vpop.eup %2650  ;;  %v821_v42 = vsel %vm39_vm0, %v3219_v26, 0.0 }
 0x304   :  { %2652 = vpow2.f32 %v794_v56  ;;  %v839_v24 = vsel %vm39_vm0, %v3221_v41, 0.0  ;;  %822 = vadd.xlane.f32.xlu0 %v821_v42 }
 0x305   :  { %2654 = vpow2.f32 %v764_v57  ;;  %840 = vadd.xlane.f32.xlu2 %v839_v24  ;;  %819 = vadd.xlane.f32.xlu1 %v818_v25 }
 0x306   :  { %2656 = vpow2.f32 %v754_v8 }
 0x307   :  { %v676_v35 = vpop.xlane.xlu0 %675  ;;  %v700_v38 = vpop.xlane.xlu1 %699 }
 0x308   :  { %v734_v31 = vsub.f32 %v3098_v40, %v700_v38  ;;  %v726_v6 = vsub.f32 %v3096_v36, %v676_v35  ;;  %v786_v40 = vmul.f32 1.442695, %v729_v22 }
 0x30a   :  { %v3232_v48 = vpop.eup %2652  ;;  %v796_v0 = vmul.f32 1.442695, %v734_v31  ;;  %v780_v12 = vmul.f32 1.442695, %v726_v6 }
 0x30b   :  { %v3236_v3 = vpop.eup %2654  ;;  %v887_v13 = vsel %vm39_vm0, %v3232_v48, 0.0 }
 0x30c   :  { %v842_v30 = vsel %vm39_vm0, %v3236_v3, 0.0  ;;  %2658 = vpow2.f32 %v796_v0  ;;  %v3244_v2 = vpop.eup %2656 }
 0x30d   :  { %888 = vadd.xlane.f32.xlu2 %v887_v13  ;;  %843 = vadd.xlane.f32.xlu1 %v842_v30  ;;  %2660 = vpow2.f32 %v786_v40  ;;  %v827_v4 = vsel %vm39_vm0, %v3244_v2, 0.0  ;;  %v731_v13 = vsub.f32 %v3042_v60, %v3170_v52 }
 0x30e   :  { %2662 = vpow2.f32 %v780_v12 }
 0x30f   :  { %v679_v29 = vpop.xlane.xlu1 %678  ;;  %v655_v18 = vpop.xlane.xlu0 %654 }
 0x310   :  { %v719_v50 = vsub.f32 %v3107_v58, %v655_v18  ;;  %v752_v58 = vmul.f32 1.442695, %v712_v19  ;;  %v727_v35 = vsub.f32 %v3105_v54, %v679_v29  ;;  %v790_v29 = vmul.f32 1.442695, %v731_v13 }
 0x312   :  { %v766_v20 = vmul.f32 1.442695, %v719_v50  ;;  %v3246_v36 = vpop.eup %2658  ;;  %v782_v46 = vmul.f32 1.442695, %v727_v35 }
 0x313   :  { %v890_v56 = vsel %vm39_vm0, %v3246_v36, 0.0  ;;  %v3256_v9 = vpop.eup %2660 }
 0x314   :  { %2664 = vpow2.f32 %v766_v20  ;;  %v3258_v24 = vpop.eup %2662  ;;  %v875_v38 = vsel %vm39_vm0, %v3256_v9, 0.0 }
 0x315   :  { %828 = vadd.xlane.f32.xlu2 %v827_v4  ;;  %891 = vadd.xlane.f32.xlu1 %v890_v56  ;;  %2666 = vpow2.f32 %v752_v58  ;;  %v866_v31 = vsel %vm39_vm0, %v3258_v24, 0.0 }
 0x317   :  { %v3254_v57 = vpop.xlane.xlu1 %807 }
 0x318   :  { %v703_v42 = vpop.xlane.xlu0 %702 }
 0x319   :  { %v735_v47 = vsub.f32 %v3118_v27, %v703_v42  ;;  %v784_v27 = vmul.f32 1.442695, %v728_v34 }
 0x31a   :  { %v3263_v25 = vpop.eup %2664 }
 0x31b   :  { %v798_v8 = vmul.f32 1.442695, %v735_v47  ;;  %v845_v22 = vsel %vm39_vm0, %v3263_v25, 0.0  ;;  %v3274_v6 = vpop.eup %2666 }
 0x31c   :  { %846 = vadd.xlane.f32.xlu0 %v845_v22  ;;  %v824_v30 = vsel %vm39_vm0, %v3274_v6, 0.0 }
 0x31d   :  { %2668 = vpow2.f32 %v798_v8  ;;  %876 = vadd.xlane.f32.xlu2 %v875_v38  ;;  %867 = vadd.xlane.f32.xlu1 %v866_v31 }
 0x31e   :  { %2670 = vpow2.f32 %v784_v27 }
 0x31f   :  { %v853_v39 = vpop.xlane.xlu1 %852 }
 0x320   :  { %v3272_v0 = vpop.xlane.xlu0 %804  ;;  %2672 = vrcp.f32 %v853_v39 }
 0x321   :  { %2674 = vpow2.f32 %v782_v46  ;;  %v32_v46 = vld [vmem:[%s3903_s2 + $0x28] sm:$0xff] }
 0x323   :  { %v3276_v54 = vpop.eup %2668 }
 0x324   :  { %v893_v40 = vsel %vm39_vm0, %v3276_v54, 0.0  ;;  %v3284_v12 = vpop.eup %2670 }
 0x325   :  { %825 = vadd.xlane.f32.xlu1 %v824_v30  ;;  %894 = vadd.xlane.f32.xlu0 %v893_v40  ;;  %v872_v60 = vsel %vm39_vm0, %v3284_v12, 0.0 }
 0x326   :  { %v2673_v50 = vpop.eup %2672 }
 0x327   :  { %v3286_v20 = vpop.eup %2674  ;;  %v945_v52 = vmul.f32 %v2673_v50, %v3130_v32  ;;  %v856_v32 = vpop.xlane.xlu1 %855 }
 0x328   :  { %v850_v18 = vpop.xlane.xlu0 %849  ;;  %v869_v19 = vsel %vm39_vm0, %v3286_v20, 0.0 }
 0x329   :  { %2676 = vrcp.f32 %v850_v18  ;;  %v977_v58 = vpack.c.bf16 %v945_v52, %v945_v52 }
 0x32a   :  { %2678 = vpow2.f32 %v790_v29 }
 0x32b   :  { %v3298_v8 = vunpack.c.l.b16 %v977_v58 }
 0x32d   :  { %873 = vadd.xlane.f32.xlu1 %v872_v60  ;;  %870 = vadd.xlane.f32.xlu0 %v869_v19 }
 0x32f   :  { %v2677_v4 = vpop.eup %2676  ;;  %v814_v22 = vpop.xlane.xlu1 %813 }
 0x330   :  { %v944_v56 = vmul.f32 %v2677_v4, %v3143_v55  ;;  %v3294_v42 = vpop.eup %2678  ;;  %v811_v31 = vpop.xlane.xlu0 %810  ;;  %v31_v55 = vld [vmem:[%s3903_s2 + $0x20] sm:$0xff] }
 0x331   :  { %v881_v35 = vsel %vm39_vm0, %v3294_v42, 0.0 }
 0x332   :  { %v976_v47 = vpack.c.bf16 %v944_v56, %v944_v56 }
 0x334   :  { %v3296_v34 = vunpack.c.l.b16 %v976_v47 }
 0x335   :  { %882 = vadd.xlane.f32.xlu0 %v881_v35 }
 0x336   :  { %3918 = vst [vmem:[#allocation6_spill] sm:$0xff] %v3296_v34 }
 0x33f   :  { %v832_v27 = vpop.xlane.xlu0 %831 }
 0x340   :  { %2680 = vrcp.f32 %v832_v27 }
 0x346   :  { %107 = vperm.xlu1 %2438, %v31_v55   ;;  %v2681_v13 = vpop.eup %2680 }
 0x347   :  { %v938_v30 = vmul.f32 %v2681_v13, %v3164_v23 }
 0x348   :  { %v835_v39 = vpop.xlane.xlu1 %834 }
 0x349   :  { %2682 = vrcp.f32 %v835_v39  ;;  %112 = vperm.xlu0 %2437, %v32_v46   ;;  %v970_v18 = vpack.c.bf16 %v938_v30, %v938_v30 }
 0x34a   :  { %2684 = vrcp.f32 %v856_v32 }
 0x34b   :  { %v3312_v60 = vunpack.c.l.b16 %v970_v18 }
 0x34f   :  { %v2683_v40 = vpop.eup %2682 }
 0x350   :  { %v939_v29 = vmul.f32 %v2683_v40, %v3174_v37  ;;  %v2685_v56 = vpop.eup %2684  ;;  %v802_v40 = vpop.xlane.xlu2 %801 }
 0x351   :  { %v946_v58 = vmul.f32 %v2685_v56, %v3141_v49 }
 0x352   :  { %v971_v50 = vpack.c.bf16 %v939_v29, %v939_v29 }
 0x353   :  { %v978_v35 = vpack.c.bf16 %v946_v58, %v946_v58 }
 0x354   :  { %v3314_v52 = vunpack.c.l.b16 %v971_v50 }
 0x355   :  { %v3322_v32 = vunpack.c.l.b16 %v978_v35 }
 0x357   :  { %v859_v4 = vpop.xlane.xlu0 %858 }
 0x358   :  { %2686 = vrcp.f32 %v859_v4  ;;  %v3334_v4 = vpop.xlane.xlu2 %879 }
 0x359   :  { %2688 = vrcp.f32 %v814_v22  ;;  %v2403_v22 = vld [vmem:[%s3902_s0 + $0x18] sm:$0xff] }
 0x35e   :  { %v2687_v47 = vpop.eup %2686 }
 0x35f   :  { %v947_v37 = vmul.f32 %v2687_v47, %v3185_v7  ;;  %v817_v39 = vpop.xlane.xlu0 %816  ;;  %v2689_v18 = vpop.eup %2688  ;;  %v2402_v47 = vld [vmem:[%s3902_s0 + $0x10] sm:$0xff] }
 0x360   :  { %v3319_v23 = vpop.xlane.xlu1 %837  ;;  %2690 = vrcp.f32 %v817_v39  ;;  %v932_v46 = vmul.f32 %v2689_v18, %v3151_v59 }
 0x361   :  { %v979_v27 = vpack.c.bf16 %v947_v37, %v947_v37 }
 0x363   :  { %v3324_v55 = vunpack.c.l.b16 %v979_v27  ;;  %v1241_v27 = vsel %vm39_vm0, %v2402_v47, 0.0 }
 0x366   :  { %v2691_v50 = vpop.eup %2690 }
 0x368   :  { %v3328_v13 = vpop.xlane.xlu1 %885 }
 0x36f   :  { %v3332_v49 = vpop.xlane.xlu0 %864 }
 0x370   :  { %v3330_v30 = vpop.xlane.xlu1 %861 }
 0x377   :  { %v823_v7 = vpop.xlane.xlu0 %822 }
 0x378   :  { %v820_v29 = vpop.xlane.xlu1 %819 }
 0x379   :  { %2692 = vrcp.f32 %v820_v29  ;;  %v1242_v29 = vsel %vm39_vm0, %v2403_v22, 0.0 }
 0x37a   :  { %2694 = vrcp.f32 %v823_v7  ;;  %v1243_v33 = vadd.f32 %v1242_v29, %v1241_v27 }
 0x37b   :  { %2696 = vrcp.f32 %v811_v31  ;;  %v933_v31 = vmul.f32 %v2691_v50, %v3190_v15  ;;  %v964_v15 = vpack.c.bf16 %v932_v46, %v932_v46 }
 0x37c   :  { %2698 = vrcp.f32 %v3254_v57  ;;  %v1244_v61 = vrot.slane %v1243_v33, 4 }
 0x37d   :  { %2700 = vrcp.f32 %v3272_v0  ;;  %v1004_v27 = vunpack.c.l.b16 %v964_v15 }
 0x37e   :  { %v1245_v53 = vadd.f32 %v1244_v61, %v1243_v33  ;;  %2702 = vrcp.f32 %v802_v40 }
 0x37f   :  { %v2693_v56 = vpop.eup %2692 }
 0x380   :  { %v844_v58 = vpop.xlane.xlu1 %843  ;;  %v2695_v37 = vpop.eup %2694  ;;  %v934_v35 = vmul.f32 %v2693_v56, %v3217_v21  ;;  %v965_v21 = vpack.c.bf16 %v933_v31, %v933_v31 }
 0x381   :  { %v935_v39 = vmul.f32 %v2695_v37, %v3219_v26  ;;  %v2697_v63 = vpop.eup %2696  ;;  %v841_v56 = vpop.xlane.xlu2 %840  ;;  %v1246_v37 = vrot.slane %v1245_v53, 2  ;;  %2704 = vrcp.f32 %v844_v58 }
 0x382   :  { %v966_v7 = vpack.c.bf16 %v934_v35, %v934_v35  ;;  %v2699_v34 = vpop.eup %2698  ;;  %v931_v50 = vmul.f32 %v2697_v63, %v3153_v62  ;;  %v1005_v59 = vunpack.c.l.b16 %v965_v21  ;;  %2706 = vrcp.f32 %v841_v56 }
 0x383   :  { %v967_v38 = vpack.c.bf16 %v935_v39, %v935_v39  ;;  %v930_v18 = vmul.f32 %v2699_v34, %v3116_v11  ;;  %v2701_v39 = vpop.eup %2700  ;;  %2708 = vrcp.f32 %v3319_v23 }
 0x384   :  { %v1006_v19 = vunpack.c.l.b16 %v966_v7  ;;  %v963_v33 = vpack.c.bf16 %v931_v50, %v931_v50  ;;  %v1010_v0 = vpack.c.b16 %v1005_v59, %v1004_v27  ;;  %v2703_v31 = vpop.eup %2702  ;;  %v929_v40 = vmul.f32 %v2701_v39, %v3132_v16 }
 0x385   :  { %v1007_v51 = vunpack.c.l.b16 %v967_v38  ;;  %v1247_v38 = vadd.f32 %v1246_v37, %v1245_v53  ;;  %v928_v34 = vmul.f32 %v2703_v31, %v3120_v14 }
 0x386   :  { %v1003_v62 = vunpack.c.l.b16 %v963_v33  ;;  %v1022_v11 = vsel %vm39_vm0, %v1010_v0, 0  ;;  %v961_v16 = vpack.c.bf16 %v929_v40, %v929_v40 }
 0x387   :  { %v1011_v57 = vpack.c.b16 %v1007_v51, %v1006_v19  ;;  %v1248_v61 = vrot.slane %v1247_v38, 1  ;;  %v962_v51 = vpack.c.bf16 %v930_v18, %v930_v18  ;;  %v2705_v58 = vpop.eup %2704  ;;  %v960_v37 = vpack.c.bf16 %v928_v34, %v928_v34 }
 0x388   :  { %v892_v26 = vpop.xlane.xlu1 %891  ;;  %v2707_v50 = vpop.eup %2706  ;;  %v942_v14 = vmul.f32 %v2705_v58, %v3236_v3  ;;  %v1001_v27 = vunpack.c.l.b16 %v961_v16 }
 0x389   :  { %v1025_v35 = vsel %vm39_vm0, %v1011_v57, 0  ;;  %v1249_v19 = vadd.f32 %v1248_v61, %v1247_v38  ;;  %v889_v46 = vpop.xlane.xlu2 %888  ;;  %v1002_v7 = vunpack.c.l.b16 %v962_v51  ;;  %v941_v33 = vmul.f32 %v2707_v50, %v3221_v41 }
 0x38a   :  { %1031 = vmatpush.bf16.xpose.msrb.mxu1 %v1025_v35  ;;  %v974_v39 = vpack.c.bf16 %v942_v14, %v942_v14  ;;  %v1000_v51 = vunpack.c.l.b16 %v960_v37 }
 0x38b   :  { %v1250_v29 = vmul.f32 %v1249_v19, %v2918_v17  ;;  %v1009_v57 = vpack.c.b16 %v1003_v62, %v1002_v7 }
 0x38c   :  { %v1008_v40 = vpack.c.b16 %v1001_v27, %v1000_v51 }
 0x38d   :  { %v3358_v21 = vsub.f32 %v2402_v47, %v1250_v29  ;;  %v3360_v56 = vsub.f32 %v2403_v22, %v1250_v29  ;;  %v2709_v22 = vpop.eup %2708  ;;  %v1019_v38 = vsel %vm39_vm0, %v1009_v57, 0 }
 0x38f   :  { %v847_v63 = vpop.xlane.xlu0 %846  ;;  %v1253_v15 = vmul.f32 %v3358_v21, %v3358_v21  ;;  %v1254_v23 = vmul.f32 %v3360_v56, %v3360_v56 }
 0x390   :  { %v868_v53 = vpop.xlane.xlu1 %867  ;;  %2710 = vrcp.f32 %v847_v63 }
 0x391   :  { %2712 = vrcp.f32 %v892_v26  ;;  %v1255_v35 = vsel %vm39_vm0, %v1253_v15, 0.0  ;;  %v1256_v47 = vsel %vm39_vm0, %v1254_v23, 0.0  ;;  %v829_v31 = vpop.xlane.xlu2 %828 }
 0x392   :  { %1032 = vmatpush.bf16.xpose.msrb.mxu1 %v1022_v11  ;;  %2714 = vrcp.f32 %v889_v46  ;;  %v1257_v59 = vadd.f32 %v1256_v47, %v1255_v35  ;;  %v940_v46 = vmul.f32 %v2709_v22, %v3192_v5  ;;  %v973_v11 = vpack.c.bf16 %v941_v33, %v941_v33 }
 0x393   :  { %2716 = vrcp.f32 %v3328_v13 }
 0x394   :  { %v1258_v0 = vrot.slane %v1257_v59, 4  ;;  %v972_v7 = vpack.c.bf16 %v940_v46, %v940_v46  ;;  %v1053_v37 = vunpack.c.l.b16 %v973_v11 }
 0x396   :  { %v2711_v26 = vpop.eup %2710  ;;  %v1259_v63 = vadd.f32 %v1258_v0, %v1257_v59  ;;  %v1052_v22 = vunpack.c.l.b16 %v972_v7 }
 0x397   :  { %v2713_v61 = vpop.eup %2712  ;;  %v943_v3 = vmul.f32 %v2711_v26, %v3263_v25  ;;  %v1054_v25 = vunpack.c.l.b16 %v974_v39 }
 0x398   :  { %v895_v18 = vpop.xlane.xlu0 %894  ;;  %v826_v19 = vpop.xlane.xlu1 %825  ;;  %v958_v41 = vmul.f32 %v2713_v61, %v3246_v36  ;;  %v1260_v34 = vrot.slane %v1259_v63, 2  ;;  %v1016_v36 = vsel %vm39_vm0, %v1008_v40, 0 }
 0x399   :  { %2718 = vrcp.f32 %v895_v18  ;;  %v975_v13 = vpack.c.bf16 %v943_v3, %v943_v3  ;;  %v2715_v62 = vpop.eup %2714  ;;  %v877_v18 = vpop.xlane.xlu2 %876  ;;  %v1058_v3 = vpack.c.b16 %v1053_v37, %v1052_v22 }
 0x39a   :  { %2720 = vrcp.f32 %v3334_v4  ;;  %1033 = vmatpush.bf16.xpose.msrb.mxu1 %v1019_v38  ;;  %v2717_v4 = vpop.eup %2716  ;;  %v957_v57 = vmul.f32 %v2715_v62, %v3232_v48  ;;  %v1261_v5 = vadd.f32 %v1260_v34, %v1259_v63  ;;  %v990_v23 = vpack.c.bf16 %v958_v41, %v958_v41 }
 0x39b   :  { %2722 = vrcp.f32 %v868_v53  ;;  %v1055_v29 = vunpack.c.l.b16 %v975_v13  ;;  %v956_v47 = vmul.f32 %v2717_v4, %v3200_v43 }
 0x39c   :  { %2724 = vrcp.f32 %v3330_v30  ;;  %v989_v59 = vpack.c.bf16 %v957_v57, %v957_v57  ;;  %v1150_v38 = vunpack.c.l.b16 %v990_v23 }
 0x39d   :  { %2726 = vrcp.f32 %v3332_v49  ;;  %v1059_v53 = vpack.c.b16 %v1055_v29, %v1054_v25  ;;  %v1262_v49 = vrot.slane %v1261_v5, 1  ;;  %v988_v51 = vpack.c.bf16 %v956_v47, %v956_v47 }
 0x39e   :  { %2728 = vrcp.f32 %v826_v19  ;;  %v1149_v43 = vunpack.c.l.b16 %v989_v59  ;;  %v1070_v25 = vsel %vm39_vm0, %v1058_v3, 0 }
 0x39f   :  { %v2719_v58 = vpop.eup %2718  ;;  %v1073_v14 = vsel %vm39_vm0, %v1059_v53, 0  ;;  %v1148_v11 = vunpack.c.l.b16 %v988_v51 }
 0x3a0   :  { %v2721_v16 = vpop.eup %2720  ;;  %v959_v30 = vmul.f32 %v2719_v58, %v3276_v54  ;;  %v871_v15 = vpop.xlane.xlu0 %870  ;;  %1079 = vmatpush.bf16.xpose.msrb.mxu2 %v1073_v14  ;;  %v1263_v54 = vadd.f32 %v1262_v49, %v1261_v5 }
 0x3a1   :  { %v2723_v50 = vpop.eup %2722  ;;  %2730 = vrcp.f32 %v871_v15  ;;  %v874_v61 = vpop.xlane.xlu1 %873  ;;  %v954_v4 = vmul.f32 %v2721_v16, %v3172_v28  ;;  %v3919_v16 = vpack.c.b16 %v3314_v52, %v3312_v60 }
 0x3a2   :  { %v2725_v35 = vpop.eup %2724  ;;  %2732 = vrcp.f32 %v829_v31  ;;  %1034 = vmatpush.bf16.xpose.msrb.mxu1 %v1016_v36  ;;  %v991_v48 = vpack.c.bf16 %v959_v30, %v959_v30  ;;  %v950_v33 = vmul.f32 %v2723_v50, %v3258_v24  ;;  %v1264_v39 = vmul.f32 %v1263_v54, %v2918_v17 }
 0x3a3   :  { %v2727_v26 = vpop.eup %2726  ;;  %v948_v19 = vmul.f32 %v2725_v35, %v3207_v10  ;;  %2734 = vrcp.f32 %v877_v18  ;;  %v986_v50 = vpack.c.bf16 %v954_v4, %v954_v4  ;;  %v1067_v35 = vsel %vm39_vm0, %v3919_v16, 0  ;;  %v3921_v4 = vld [vmem:[#allocation6_spill] sm:$0xff] }
 0x3a4   :  { %v1151_v27 = vunpack.c.l.b16 %v991_v48  ;;  %v2729_v0 = vpop.eup %2728  ;;  %v949_v46 = vmul.f32 %v2727_v26, %v3209_v1  ;;  %v3387_v63 = vadd.f32 1e-05, %v1264_v39  ;;  %2736 = vrcp.f32 %v874_v61  ;;  %v3924_v16 = vld [vmem:[#allocation2_spill] sm:$0xff] }
 0x3a5   :  { %v982_v17 = vpack.c.bf16 %v950_v33, %v950_v33  ;;  %v936_v10 = vmul.f32 %v2729_v0, %v3274_v6  ;;  %v980_v34 = vpack.c.bf16 %v948_v19, %v948_v19 }
 0x3a6   :  { %v1155_v31 = vpack.c.b16 %v1151_v27, %v1150_v38  ;;  %v981_v7 = vpack.c.bf16 %v949_v46, %v949_v46  ;;  %vm1272_vm8 = vweird.f32 %v3387_v63 }
 0x3a7   :  { %v2731_v13 = vpop.eup %2730  ;;  %v1102_v58 = vunpack.c.l.b16 %v982_v17  ;;  %v968_v5 = vpack.c.bf16 %v936_v10, %v936_v10  ;;  %v1100_v23 = vunpack.c.l.b16 %v980_v34  ;;  %v3920_v17 = vpack.c.b16 %v3324_v55, %v3322_v32 }
 0x3a8   :  { %v2733_v62 = vpop.eup %2732  ;;  %v883_v41 = vpop.xlane.xlu0 %882  ;;  %v1169_v24 = vsel %vm39_vm0, %v1155_v31, 0  ;;  %v951_v40 = vmul.f32 %v2731_v13, %v3286_v20  ;;  %1080 = vmatpush.bf16.xpose.msrb.mxu2 %v1070_v25  ;;  %v1154_v20 = vpack.c.b16 %v1149_v43, %v1148_v11  ;;  %v1101_v49 = vunpack.c.l.b16 %v981_v7 }
 0x3a9   :  { %2738 = vrcp.f32 %v883_v41  ;;  %v937_v1 = vmul.f32 %v2733_v62, %v3244_v2  ;;  %v2735_v57 = vpop.eup %2734  ;;  %v1048_v48 = vunpack.c.l.b16 %v968_v5  ;;  %v1115_v25 = vsel %vm39_vm0, %v3920_v17, 0 }
 0x3aa   :  { %1175 = vmatpush.bf16.xpose.msra.mxu1 %v1169_v24  ;;  %v983_v29 = vpack.c.bf16 %v951_v40, %v951_v40  ;;  %2740 = vrsqrt.f32 %v3387_v63  ;;  %v2737_v30 = vpop.eup %2736  ;;  %v1166_v2 = vsel %vm39_vm0, %v1154_v20, 0  ;;  %v953_v26 = vmul.f32 %v2735_v57, %v3256_v9 }
 0x3ab   :  { %v969_v6 = vpack.c.bf16 %v937_v1, %v937_v1  ;;  %v952_v47 = vmul.f32 %v2737_v30, %v3284_v12  ;;  %v1106_v38 = vpack.c.b16 %v1101_v49, %v1100_v23  ;;  %v3922_v32 = vpack.c.b16 %v3298_v8, %v3921_v4  ;;  %v2871_v8 = vld [vmem:[%s3904_s1 + $0x8] sm:$0xff] }
 0x3ac   :  { %v1103_v53 = vunpack.c.l.b16 %v983_v29  ;;  %v985_v39 = vpack.c.bf16 %v953_v26, %v953_v26 }
 0x3ad   :  { %v1049_v54 = vunpack.c.l.b16 %v969_v6  ;;  %v984_v60 = vpack.c.bf16 %v952_v47, %v952_v47  ;;  %v1118_v31 = vsel %vm39_vm0, %v1106_v38, 0  ;;  %v1112_v55 = vsel %vm39_vm0, %v3922_v32, 0 }
 0x3ae   :  { %v1107_v15 = vpack.c.b16 %v1103_v53, %v1102_v58  ;;  %v1145_v46 = vunpack.c.l.b16 %v985_v39 }
 0x3af   :  { %v2739_v36 = vpop.eup %2738  ;;  %v1056_v33 = vpack.c.b16 %v1049_v54, %v1048_v48  ;;  %v1144_v19 = vunpack.c.l.b16 %v984_v60  ;;  %v3925_v54 = vld [vmem:[#allocation5_spill] sm:$0xff] }
 0x3b0   :  { %v2741_v14 = vpop.eup %2740  ;;  %v1121_v37 = vsel %vm39_vm0, %v1107_v15, 0  ;;  %v955_v28 = vmul.f32 %v2739_v36, %v3294_v42  ;;  %1081 = vmatpush.bf16.xpose.msrb.mxu2 %v1067_v35  ;;  %v1146_v42 = vunpack.c.l.b16 %v986_v50 }
 0x3b1   :  { %1127 = vmatpush.bf16.xpose.msrb.mxu3 %v1121_v37  ;;  %v1267_v22 = vmul.f32 %v2741_v14, %v3387_v63  ;;  %v1064_v9 = vsel %vm39_vm0, %v1056_v33, 0  ;;  %vm1273_vm9 = vweird.f32 %v2741_v14  ;;  %v1152_v41 = vpack.c.b16 %v1145_v46, %v1144_v19  ;;  %v3923_v37 = vld [vmem:[#allocation3_spill] sm:$0xff]  ;;  %v2433_v19 = vld [vmem:[%s3905_s3] sm:$0xff] }
 0x3b2   :  { %1176 = vmatpush.bf16.xpose.msra.mxu1 %v1166_v2  ;;  %v987_v59 = vpack.c.bf16 %v955_v28, %v955_v28  ;;  %vm1274_vm10 = vmor %vm1272_vm8, %vm1273_vm9 }
 0x3b3   :  { %v1268_v18 = vmul.f32 %v2741_v14, %v1267_v22  ;;  %v1160_v63 = vsel %vm39_vm0, %v1152_v41, 0 }
 0x3b4   :  { %v1147_v27 = vunpack.c.l.b16 %v987_v59 }
 0x3b5   :  { %v1269_v52 = vmul.f32 0.5, %v1268_v18 }
 0x3b6   :  { %v1153_v61 = vpack.c.b16 %v1147_v27, %v1146_v42 }
 0x3b7   :  { %v1270_v0 = vsub.f32 1.5, %v1269_v52  ;;  %v3926_v52 = vld [vmem:[#allocation4_spill] sm:$0xff] }
 0x3b8   :  { %v3406_v3 = vpop.permute.xlu1 %107  ;;  %v1163_v51 = vsel %vm39_vm0, %v1153_v61, 0  ;;  %1082 = vmatpush.bf16.xpose.msrb.mxu2 %v1064_v9  ;;  %v3927_v9 = vmov 0  }
 0x3b9   :  { %v160_v12 = vadd.f32 %v3014_v44, %v3406_v3  ;;  %1128 = vmatpush.bf16.xpose.msrb.mxu3 %v1118_v31  ;;  %v1271_v62 = vmul.f32 %v2741_v14, %v1270_v0 }
 0x3ba   :  { %1177 = vmatpush.bf16.xpose.msra.mxu1 %v1163_v51 }
 0x3bb   :  { %v342_v13 = vrot.slane %v160_v12, 4  ;;  %v346_v43 = vpack.c.bf16 %v160_v12, %v160_v12  ;;  %v3415_v24 = vpop.permute.xlu0 %112  ;;  %v1275_v40 = vsel %vm1274_vm10, %v2741_v14, %v1271_v62 }
 0x3bc   :  { %v162_v10 = vadd.f32 %v3016_v45, %v3415_v24  ;;  %v1276_v29 = vmul.f32 %v1275_v40, %v3358_v21  ;;  %v1277_v11 = vmul.f32 %v1275_v40, %v3360_v56  ;;  %v2870_v45 = vld [vmem:[%s3904_s1] sm:$0xff]  ;;  %v2872_v21 = vld [vmem:[%s3904_s1 + $0x10] sm:$0xff] }
 0x3bd   :  { %2393 = vmatmul.msk.bf16.vlgmr.msrb.gmra.mxu1 %vm39_vm0, %v346_v43  ;;  %v347_v44 = vpack.c.bf16 %v342_v13, %v342_v13 }
 0x3be   :  { %v343_v1 = vrot.slane %v162_v10, 4  ;;  %v1278_v34 = vpack.c.bf16 %v1277_v11, %v1276_v29  ;;  %v348_v53 = vpack.c.bf16 %v162_v10, %v162_v10 }
 0x3bf   :  { %2394 = vmatmul.msk.bf16.vlgmr.msrb.gmra.mxu2 %vm39_vm0, %v347_v44 }
 0x3c0   :  { %v349_v58 = vpack.c.bf16 %v343_v1, %v343_v1 }
 0x3c1   :  { %1129 = vmatpush.bf16.xpose.msrb.mxu3 %v1115_v25 }
 0x3c2   :  { %1178 = vmatpush.bf16.xpose.msra.mxu1 %v1160_v63 }
 0x3c9   :  { %1130 = vmatpush.bf16.xpose.msrb.mxu3 %v1112_v55 }
 0x3cd   :  { %2396 = vmatmul.msk.bf16.vlgmr.msra.gmra.mxu1 %vm39_vm0, %v349_v58 }
 0x3d0   :  { %2395 = vmatmul.msk.bf16.vlgmr.msrb.gmra.mxu3 %vm39_vm0, %v348_v53 }
 0x3d1   :  { %1286 = vmatpush.bf16.msra.mxu3 %v1278_v34 }
 0x3e0   :  { %2404 = vmatmul.msk.bf16.vlgmr.msra.gmra.mxu3 %vm130_vm5, %v2870_v45 }
 0x3f0   :  { %2405 = vmatmul.msk.bf16.gmra.mxu3 %vm130_vm5, %v2871_v8 }
 0x400   :  { %2406 = vmatmul.msk.bf16.gmra.mxu3 %vm130_vm5, %v2872_v21 }
 0x43a   :  { %v1036_v56 = vpop.f32.mrf.mxu1 }
 0x43b   :  { %1188 = vst [vmem:[#allocation1] ss:$2 sm:$0xff] %v1036_v56 }
 0x442   :  { %v1038_v20 = vpop.f32.mrf.mxu1  ;;  %v1084_v7 = vpop.f32.mrf.mxu2 }
 0x443   :  { %1190 = vst [vmem:[#allocation1 + $0x1] ss:$2 sm:$0xff] %v1084_v7 }
 0x44a   :  { %v1180_v57 = vpop.f32.mrf.mxu1  ;;  %v1086_v5 = vpop.f32.mrf.mxu2  ;;  %v1195_v6 = vld.sshfl [vmem:[#allocation1] sm:$0xff pattern:$0x75316420] }
 0x44b   :  { %1194 = vst [vmem:[#allocation1 + $0x11] ss:$2 sm:$0xff] %v1180_v57 }
 0x452   :  { %v1182_v30 = vpop.f32.mrf.mxu1 }
 0x453   :  { %v1132_v15 = vpop.f32.mrf.mxu3 }
 0x454   :  { %1192 = vst [vmem:[#allocation1 + $0x10] ss:$2 sm:$0xff] %v1132_v15 }
 0x45b   :  { %v1134_v36 = vpop.f32.mrf.mxu3  ;;  %v1196_v23 = vld.sshfl [vmem:[#allocation1 + $0x10] sm:$0xff pattern:$0x75316420] }
 0x45c   :  { %v1199_v50 = vpack.c.bf16 %v1196_v23, %v1195_v6 }
 0x45e   :  { %1215 = vmatpush.bf16.msra.mxu2 %v1199_v50 }
 0x461   :  { %2401 = vmatmul.msk.bf16.vlgmr.msra.gmra.mxu2 %vm130_vm5, %v2433_v19 }
 0x463   :  { %v1288_v14 = vpop.f32.mrf.mxu3 }
 0x464   :  { %v1289_v2 = vadd.f32 %v1288_v14, %v3923_v37 }
 0x466   :  { %v1305_v28 = vrot.slane %v1289_v2, 4 }
 0x46b   :  { %v1290_v49 = vpop.f32.mrf.mxu3 }
 0x46c   :  { %v1291_v35 = vadd.f32 %v1290_v49, %v3924_v16 }
 0x46e   :  { %v1306_v48 = vrot.slane %v1291_v35, 4  ;;  %v2565_v47 = vpack.i.bf16 %v1291_v35, %v1305_v28 }
 0x470   :  { %2566 = vxpose.xlu0.b32.start.end [1/1] (short) (narrow) %v2565_v47, 64  ;;  %v2523_v22 = vpack.i.bf16 %v1306_v48, %v1289_v2 }
 0x472   :  { %2524 = vxpose.xlu2.b32.start.end [1/1] (short) (narrow) %v2523_v22, 64 }
 0x473   :  { %v1293_v59 = vpop.f32.mrf.mxu3 }
 0x474   :  { %v1294_v26 = vadd.f32 %v1293_v59, %v3925_v54 }
 0x476   :  { %v1471_v18 = vrot.slane %v1294_v26, 4  ;;  %v1475_v38 = vpack.c.bf16 %v1294_v26, %v1294_v26 }
 0x478   :  { %v1476_v42 = vpack.c.bf16 %v1471_v18, %v1471_v18  ;;  %v1522_v27 = vsel %vm383_vm6, %v1475_v38, 0 }
 0x479   :  { %1531 = vmatpush.bf16.msrb.mxu2 %v1522_v27 }
 0x47a   :  { %v1586_v33 = vsel %vm383_vm6, %v1476_v42, 0 }
 0x47b   :  { %v1295_v60 = vpop.f32.mrf.mxu3  ;;  %1595 = vmatpush.bf16.msra.mxu0 %v1586_v33 }
 0x47c   :  { %v1296_v61 = vadd.f32 %v1295_v60, %v3926_v52 }
 0x47e   :  { %v1472_v39 = vrot.slane %v1296_v61, 4  ;;  %v1477_v0 = vpack.c.bf16 %v1296_v61, %v1296_v61 }
 0x480   :  { %v1478_v12 = vpack.c.bf16 %v1472_v39, %v1472_v39  ;;  %v1650_v31 = vsel %vm383_vm6, %v1477_v0, 0 }
 0x481   :  { %1659 = vmatpush.bf16.msrb.mxu1 %v1650_v31 }
 0x482   :  { %v1714_v51 = vsel %vm383_vm6, %v1478_v12, 0 }
 0x483   :  { %1723 = vmatpush.bf16.msrb.mxu3 %v1714_v51 }
 0x4d4   :  { %2607 = vset.pattern.permute.xlu2 %v3927_v9 }
 0x50b   :  { %v2525_v13 = vpop.trf.xlu2 }
 0x50c   :  { %v2529_v43 = vunpack.i.h.bf16 %v2525_v13  ;;  %v2526_v46 = vunpack.i.l.bf16 %v2525_v13 }
 0x50e   :  { %v1461_v62 = vpack.c.bf16 %v2529_v43, %v2529_v43  ;;  %v1437_v44 = vpack.c.bf16 %v2526_v46, %v2526_v46 }
 0x510   :  { %v1689_v29 = vunpack.c.l.b16 %v1461_v62  ;;  %v1497_v11 = vunpack.c.l.b16 %v1437_v44 }
 0x513   :  { %v2530_v41 = vpop.trf.xlu2 }
 0x514   :  { %v2534_v40 = vunpack.i.h.bf16 %v2530_v41  ;;  %v2531_v17 = vunpack.i.l.bf16 %v2530_v41  ;;  %v2567_v25 = vpop.trf.xlu0 }
 0x515   :  { %v2571_v4 = vunpack.i.h.bf16 %v2567_v25  ;;  %v2568_v32 = vunpack.i.l.bf16 %v2567_v25 }
 0x516   :  { %v1462_v63 = vpack.c.bf16 %v2534_v40, %v2534_v40  ;;  %v1438_v10 = vpack.c.bf16 %v2531_v17, %v2531_v17 }
 0x517   :  { %v1453_v45 = vpack.c.bf16 %v2571_v4, %v2571_v4  ;;  %v1445_v8 = vpack.c.bf16 %v2568_v32, %v2568_v32 }
 0x518   :  { %v1690_v1 = vunpack.c.l.b16 %v1462_v63  ;;  %v1498_v34 = vunpack.c.l.b16 %v1438_v10 }
 0x519   :  { %v1625_v15 = vunpack.c.l.b16 %v1453_v45  ;;  %v1561_v36 = vunpack.c.l.b16 %v1445_v8 }
 0x51a   :  { %v1505_v55 = vpack.c.b16 %v1498_v34, %v1497_v11  ;;  %v1697_v58 = vpack.c.b16 %v1690_v1, %v1689_v29 }
 0x51b   :  { %v2535_v53 = vpop.trf.xlu2 }
 0x51c   :  { %2419 = vmatmul.msk.bf16.vlgmr.msrb.gmra.mxu3 %vm370_vm7, %v1697_v58  ;;  %v2572_v21 = vpop.trf.xlu0  ;;  %2407 = vmatmul.msk.bf16.vlgmr.msrb.gmra.mxu2 %vm370_vm7, %v1505_v55  ;;  %v2539_v7 = vunpack.i.h.bf16 %v2535_v53  ;;  %v2536_v57 = vunpack.i.l.bf16 %v2535_v53 }
 0x51d   :  { %v2576_v56 = vunpack.i.h.bf16 %v2572_v21  ;;  %v2573_v20 = vunpack.i.l.bf16 %v2572_v21 }
 0x51e   :  { %v1463_v50 = vpack.c.bf16 %v2539_v7, %v2539_v7  ;;  %v1439_v14 = vpack.c.bf16 %v2536_v57, %v2536_v57 }
 0x51f   :  { %v1454_v5 = vpack.c.bf16 %v2576_v56, %v2576_v56  ;;  %v1446_v30 = vpack.c.bf16 %v2573_v20, %v2573_v20 }
 0x520   :  { %v1691_v22 = vunpack.c.l.b16 %v1463_v50  ;;  %v1499_v59 = vunpack.c.l.b16 %v1439_v14 }
 0x521   :  { %v1626_v6 = vunpack.c.l.b16 %v1454_v5  ;;  %v1562_v23 = vunpack.c.l.b16 %v1446_v30 }
 0x523   :  { %v1569_v37 = vpack.c.b16 %v1562_v23, %v1561_v36  ;;  %v1633_v2 = vpack.c.b16 %v1626_v6, %v1625_v15  ;;  %v2540_v49 = vpop.trf.xlu2 }
 0x524   :  { %v2544_v28 = vunpack.i.h.bf16 %v2540_v49  ;;  %v2541_v16 = vunpack.i.l.bf16 %v2540_v49  ;;  %v2577_v35 = vpop.trf.xlu0 }
 0x525   :  { %2411 = vmatmul.msk.bf16.vlgmr.msra.gmra.mxu0 %vm370_vm7, %v1569_v37  ;;  %2415 = vmatmul.msk.bf16.vlgmr.msrb.gmra.mxu1 %vm370_vm7, %v1633_v2  ;;  %v2581_v54 = vunpack.i.h.bf16 %v2577_v35  ;;  %v2578_v26 = vunpack.i.l.bf16 %v2577_v35 }
 0x526   :  { %v1464_v48 = vpack.c.bf16 %v2544_v28, %v2544_v28  ;;  %v1440_v47 = vpack.c.bf16 %v2541_v16, %v2541_v16 }
 0x527   :  { %v1455_v60 = vpack.c.bf16 %v2581_v54, %v2581_v54  ;;  %v1447_v52 = vpack.c.bf16 %v2578_v26, %v2578_v26 }
 0x528   :  { %v1692_v18 = vunpack.c.l.b16 %v1464_v48  ;;  %v1500_v38 = vunpack.c.l.b16 %v1440_v47 }
 0x529   :  { %v1563_v19 = vunpack.c.l.b16 %v1447_v52  ;;  %v1627_v43 = vunpack.c.l.b16 %v1455_v60 }
 0x52a   :  { %v1698_v42 = vpack.c.b16 %v1692_v18, %v1691_v22  ;;  %v1506_v27 = vpack.c.b16 %v1500_v38, %v1499_v59 }
 0x52b   :  { %v2545_v33 = vpop.trf.xlu2 }
 0x52c   :  { %2420 = vmatmul.msk.bf16.gmra.mxu3 %vm370_vm7, %v1698_v42  ;;  %v2582_v61 = vpop.trf.xlu0  ;;  %2408 = vmatmul.msk.bf16.gmra.mxu2 %vm370_vm7, %v1506_v27  ;;  %v2549_v12 = vunpack.i.h.bf16 %v2545_v33  ;;  %v2546_v31 = vunpack.i.l.bf16 %v2545_v33 }
 0x52d   :  { %v2586_v39 = vunpack.i.h.bf16 %v2582_v61  ;;  %v2583_v0 = vunpack.i.l.bf16 %v2582_v61 }
 0x52e   :  { %v1465_v62 = vpack.c.bf16 %v2549_v12, %v2549_v12  ;;  %v1441_v44 = vpack.c.bf16 %v2546_v31, %v2546_v31 }
 0x52f   :  { %v1456_v51 = vpack.c.bf16 %v2586_v39, %v2586_v39  ;;  %v1448_v9 = vpack.c.bf16 %v2583_v0, %v2583_v0 }
 0x530   :  { %v1501_v1 = vunpack.c.l.b16 %v1441_v44  ;;  %v1693_v34 = vunpack.c.l.b16 %v1465_v62  ;;  %v3474_v44 = vpop.f32.mrf.mxu2 }
 0x531   :  { %v1564_v13 = vunpack.c.l.b16 %v1448_v9  ;;  %v1628_v46 = vunpack.c.l.b16 %v1456_v51 }
 0x533   :  { %v2550_v41 = vpop.trf.xlu2  ;;  %v1570_v40 = vpack.c.b16 %v1564_v13, %v1563_v19  ;;  %v1634_v17 = vpack.c.b16 %v1628_v46, %v1627_v43 }
 0x534   :  { %v2554_v25 = vunpack.i.h.bf16 %v2550_v41  ;;  %v2551_v63 = vunpack.i.l.bf16 %v2550_v41  ;;  %v2587_v10 = vpop.trf.xlu0 }
 0x535   :  { %2412 = vmatmul.msk.bf16.gmra.mxu0 %vm370_vm7, %v1570_v40  ;;  %2416 = vmatmul.msk.bf16.gmra.mxu1 %vm370_vm7, %v1634_v17  ;;  %v2591_v4 = vunpack.i.h.bf16 %v2587_v10  ;;  %v2588_v32 = vunpack.i.l.bf16 %v2587_v10  ;;  %v3478_v40 = vpop.f32.mrf.mxu3 }
 0x536   :  { %v1466_v29 = vpack.c.bf16 %v2554_v25, %v2554_v25  ;;  %v1442_v11 = vpack.c.bf16 %v2551_v63, %v2551_v63 }
 0x537   :  { %v1457_v21 = vpack.c.bf16 %v2591_v4, %v2591_v4  ;;  %v1449_v56 = vpack.c.bf16 %v2588_v32, %v2588_v32 }
 0x538   :  { %v1502_v55 = vunpack.c.l.b16 %v1442_v11  ;;  %v1694_v58 = vunpack.c.l.b16 %v1466_v29  ;;  %v3476_v41 = vpop.f32.mrf.mxu2 }
 0x539   :  { %v1565_v6 = vunpack.c.l.b16 %v1449_v56  ;;  %v1629_v23 = vunpack.c.l.b16 %v1457_v21 }
 0x53a   :  { %v1507_v53 = vpack.c.b16 %v1502_v55, %v1501_v1  ;;  %v1699_v45 = vpack.c.b16 %v1694_v58, %v1693_v34 }
 0x53b   :  { %v2555_v8 = vpop.trf.xlu2 }
 0x53c   :  { %2409 = vmatmul.msk.bf16.gmra.mxu2 %vm370_vm7, %v1507_v53  ;;  %v2592_v20 = vpop.trf.xlu0  ;;  %2421 = vmatmul.msk.bf16.gmra.mxu3 %vm370_vm7, %v1699_v45  ;;  %v2559_v5 = vunpack.i.h.bf16 %v2555_v8  ;;  %v2556_v30 = vunpack.i.l.bf16 %v2555_v8 }
 0x53d   :  { %v2596_v7 = vunpack.i.h.bf16 %v2592_v20  ;;  %v2593_v57 = vunpack.i.l.bf16 %v2592_v20  ;;  %v3492_v1 = vpop.f32.mrf.mxu3 }
 0x53e   :  { %v1467_v37 = vpack.c.bf16 %v2559_v5, %v2559_v5  ;;  %v1443_v2 = vpack.c.bf16 %v2556_v30, %v2556_v30 }
 0x53f   :  { %v1458_v15 = vpack.c.bf16 %v2596_v7, %v2596_v7  ;;  %v1450_v36 = vpack.c.bf16 %v2593_v57, %v2593_v57 }
 0x540   :  { %v1503_v54 = vunpack.c.l.b16 %v1443_v2  ;;  %v1695_v26 = vunpack.c.l.b16 %v1467_v37 }
 0x541   :  { %v1566_v50 = vunpack.c.l.b16 %v1450_v36  ;;  %v1630_v14 = vunpack.c.l.b16 %v1458_v15 }
 0x543   :  { %v2560_v49 = vpop.trf.xlu2  ;;  %v1571_v28 = vpack.c.b16 %v1566_v50, %v1565_v6  ;;  %v1635_v16 = vpack.c.b16 %v1630_v14, %v1629_v23 }
 0x544   :  { %v2564_v35 = vunpack.i.h.bf16 %v2560_v49  ;;  %v2561_v48 = vunpack.i.l.bf16 %v2560_v49  ;;  %v2597_v47 = vpop.trf.xlu0 }
 0x545   :  { %2413 = vmatmul.msk.bf16.gmra.mxu0 %vm370_vm7, %v1571_v28  ;;  %2417 = vmatmul.msk.bf16.gmra.mxu1 %vm370_vm7, %v1635_v16  ;;  %v2601_v18 = vunpack.i.h.bf16 %v2597_v47  ;;  %v2598_v38 = vunpack.i.l.bf16 %v2597_v47 }
 0x546   :  { %v1468_v22 = vpack.c.bf16 %v2564_v35, %v2564_v35  ;;  %v1444_v59 = vpack.c.bf16 %v2561_v48, %v2561_v48 }
 0x547   :  { %v1459_v52 = vpack.c.bf16 %v2601_v18, %v2601_v18  ;;  %v1451_v61 = vpack.c.bf16 %v2598_v38, %v2598_v38 }
 0x548   :  { %v1504_v42 = vunpack.c.l.b16 %v1444_v59  ;;  %v1696_v27 = vunpack.c.l.b16 %v1468_v22 }
 0x549   :  { %v1567_v9 = vunpack.c.l.b16 %v1451_v61  ;;  %v1631_v19 = vunpack.c.l.b16 %v1459_v52 }
 0x54a   :  { %v1508_v33 = vpack.c.b16 %v1504_v42, %v1503_v54  ;;  %v1700_v60 = vpack.c.b16 %v1696_v27, %v1695_v26 }
 0x54c   :  { %2410 = vmatmul.msk.bf16.gmra.mxu2 %vm370_vm7, %v1508_v33  ;;  %v2602_v39 = vpop.trf.xlu0  ;;  %2422 = vmatmul.msk.bf16.gmra.mxu3 %vm370_vm7, %v1700_v60 }
 0x54d   :  { %v2606_v0 = vunpack.i.h.bf16 %v2602_v39  ;;  %v2603_v12 = vunpack.i.l.bf16 %v2602_v39 }
 0x54f   :  { %v1460_v31 = vpack.c.bf16 %v2606_v0, %v2606_v0  ;;  %v1452_v51 = vpack.c.bf16 %v2603_v12, %v2603_v12 }
 0x551   :  { %v1568_v13 = vunpack.c.l.b16 %v1452_v51  ;;  %v1632_v43 = vunpack.c.l.b16 %v1460_v31 }
 0x553   :  { %v1572_v46 = vpack.c.b16 %v1568_v13, %v1567_v9  ;;  %v1636_v62 = vpack.c.b16 %v1632_v43, %v1631_v19 }
 0x555   :  { %2414 = vmatmul.msk.bf16.gmra.mxu0 %vm370_vm7, %v1572_v46  ;;  %2418 = vmatmul.msk.bf16.gmra.mxu1 %vm370_vm7, %v1636_v62 }
 0x59f   :  { %v3480_v17 = vpop.f32.mrf.mxu2  ;;  %v3502_v58 = vpop.f32.mrf.mxu3 }
 0x5a0   :  { %v1745_v25 = vsel %vm39_vm0, %v3480_v17, -inf  ;;  %v1817_v50 = vsel %vm39_vm0, %v3502_v58, -inf }
 0x5a1   :  { %1746 = vmax.xlane.f32.xlu1 %v1745_v25 }
 0x5a2   :  { %v3484_v63 = vpop.f32.mrf.mxu0  ;;  %v3486_v10 = vpop.f32.mrf.mxu1 }
 0x5a3   :  { %v1769_v18 = vsel %vm39_vm0, %v3484_v63, -inf }
 0x5a7   :  { %v3488_v29 = vpop.f32.mrf.mxu2  ;;  %v3516_v7 = vpop.f32.mrf.mxu3 }
 0x5a8   :  { %v1748_v11 = vsel %vm39_vm0, %v3488_v29, -inf }
 0x5a9   :  { %1749 = vmax.xlane.f32.xlu1 %v1748_v11 }
 0x5aa   :  { %v3494_v34 = vpop.f32.mrf.mxu0  ;;  %v3496_v4 = vpop.f32.mrf.mxu1 }
 0x5ab   :  { %v1772_v28 = vsel %vm39_vm0, %v3494_v34, -inf  ;;  %v1796_v42 = vsel %vm39_vm0, %v3496_v4, -inf }
 0x5af   :  { %v3498_v32 = vpop.f32.mrf.mxu2  ;;  %v3526_v36 = vpop.f32.mrf.mxu3 }
 0x5b0   :  { %v1751_v55 = vsel %vm39_vm0, %v3498_v32, -inf  ;;  %v1823_v23 = vsel %vm39_vm0, %v3526_v36, -inf }
 0x5b1   :  { %1752 = vmax.xlane.f32.xlu1 %v1751_v55 }
 0x5b2   :  { %v3504_v53 = vpop.f32.mrf.mxu0  ;;  %v3508_v8 = vpop.f32.mrf.mxu1 }
 0x5b3   :  { %v1775_v45 = vsel %vm39_vm0, %v3504_v53, -inf  ;;  %v1799_v56 = vsel %vm39_vm0, %v3508_v8, -inf }
 0x5b4   :  { %1776 = vmax.xlane.f32.xlu0 %v1775_v45 }
 0x5b7   :  { %v3510_v21 = vpop.f32.mrf.mxu2  ;;  %v3552_v22 = vpop.f32.mrf.mxu3 }
 0x5b8   :  { %v1754_v30 = vsel %vm39_vm0, %v3510_v21, -inf  ;;  %v1826_v54 = vsel %vm39_vm0, %v3552_v22, -inf }
 0x5b9   :  { %1800 = vmax.xlane.f32.xlu1 %v1799_v56 }
 0x5ba   :  { %v3514_v20 = vpop.f32.mrf.mxu0  ;;  %v3534_v14 = vpop.f32.mrf.mxu1 }
 0x5bb   :  { %v1778_v57 = vsel %vm39_vm0, %v3514_v20, -inf  ;;  %v1802_v59 = vsel %vm39_vm0, %v3534_v14, -inf }
 0x5bc   :  { %1779 = vmax.xlane.f32.xlu2 %v1778_v57 }
 0x5bf   :  { %v3520_v5 = vpop.f32.mrf.mxu2  ;;  %v3568_v33 = vpop.f32.mrf.mxu3 }
 0x5c0   :  { %v1757_v15 = vsel %vm39_vm0, %v3520_v5, -inf  ;;  %v1829_v60 = vsel %vm39_vm0, %v3568_v33, -inf }
 0x5c1   :  { %1755 = vmax.xlane.f32.xlu1 %v1754_v30  ;;  %v1820_v30 = vsel %vm39_vm0, %v3516_v7, -inf }
 0x5c2   :  { %v3538_v2 = vpop.f32.mrf.mxu0  ;;  %v3544_v16 = vpop.f32.mrf.mxu1 }
 0x5c3   :  { %v1781_v49 = vsel %vm39_vm0, %v3538_v2, -inf  ;;  %v1805_v47 = vsel %vm39_vm0, %v3544_v16, -inf }
 0x5c4   :  { %1758 = vmax.xlane.f32.xlu2 %v1757_v15 }
 0x5c7   :  { %v3528_v6 = vpop.f32.mrf.mxu2  ;;  %v3587_v46 = vpop.f32.mrf.mxu3 }
 0x5c8   :  { %v1760_v27 = vsel %vm39_vm0, %v3528_v6, -inf  ;;  %v1832_v11 = vsel %vm39_vm0, %v3587_v46, -inf }
 0x5c9   :  { %1824 = vmax.xlane.f32.xlu1 %v1823_v23 }
 0x5ca   :  { %v3558_v26 = vpop.f32.mrf.mxu0  ;;  %v3572_v52 = vpop.f32.mrf.mxu1 }
 0x5cb   :  { %v1784_v38 = vsel %vm39_vm0, %v3558_v26, -inf  ;;  %v1808_v61 = vsel %vm39_vm0, %v3572_v52, -inf }
 0x5cc   :  { %1818 = vmax.xlane.f32.xlu2 %v1817_v50 }
 0x5cf   :  { %v3536_v37 = vpop.f32.mrf.mxu2 }
 0x5d0   :  { %v1763_v12 = vsel %vm39_vm0, %v3536_v37, -inf }
 0x5d1   :  { %1782 = vmax.xlane.f32.xlu1 %v1781_v49 }
 0x5d2   :  { %v3576_v39 = vpop.f32.mrf.mxu0  ;;  %v3583_v9 = vpop.f32.mrf.mxu1 }
 0x5d3   :  { %v1787_v0 = vsel %vm39_vm0, %v3576_v39, -inf  ;;  %v1811_v13 = vsel %vm39_vm0, %v3583_v9, -inf }
 0x5d4   :  { %1773 = vmax.xlane.f32.xlu2 %v1772_v28 }
 0x5d7   :  { %v3546_v35 = vpop.f32.mrf.mxu2 }
 0x5d8   :  { %v1766_v48 = vsel %vm39_vm0, %v3546_v35, -inf }
 0x5d9   :  { %1767 = vmax.xlane.f32.xlu0 %v1766_v48  ;;  %1806 = vmax.xlane.f32.xlu1 %v1805_v47  ;;  %v1793_v48 = vsel %vm39_vm0, %v3486_v10, -inf }
 0x5da   :  { %v3595_v55 = vpop.f32.mrf.mxu0 }
 0x5db   :  { %v1790_v45 = vsel %vm39_vm0, %v3595_v55, -inf }
 0x5e1   :  { %1803 = vmax.xlane.f32.xlu0 %v1802_v59  ;;  %1827 = vmax.xlane.f32.xlu1 %v1826_v54 }
 0x5e9   :  { %1770 = vmax.xlane.f32.xlu0 %v1769_v18  ;;  %1785 = vmax.xlane.f32.xlu1 %v1784_v38  ;;  %v3613_v18 = vpop.f32.mrf.mxu3 }
 0x5ea   :  { %v1835_v38 = vsel %vm39_vm0, %v3613_v18, -inf }
 0x5f1   :  { %1797 = vmax.xlane.f32.xlu0 %v1796_v42  ;;  %1761 = vmax.xlane.f32.xlu1 %v1760_v27  ;;  %v3621_v27 = vpop.f32.mrf.mxu1 }
 0x5f9   :  { %1830 = vmax.xlane.f32.xlu1 %v1829_v60 }
 0x601   :  { %1809 = vmax.xlane.f32.xlu1 %v1808_v61 }
 0x609   :  { %1788 = vmax.xlane.f32.xlu1 %v1787_v0  ;;  %v1814_v0 = vsel %vm39_vm0, %v3621_v27, -inf }
 0x611   :  { %1764 = vmax.xlane.f32.xlu1 %v1763_v12 }
 0x614   :  { %v1747_v31 = vpop.xlane.xlu1 %1746 }
 0x615   :  { %v1841_v51 = vsub.f32 %v3480_v17, %v1747_v31 }
 0x617   :  { %v1873_v19 = vmul.f32 1.442695, %v1841_v51  ;;  %v3628_v51 = vpop.f32.mrf.mxu3 }
 0x619   :  { %2742 = vpow2.f32 %v1873_v19  ;;  %1812 = vmax.xlane.f32.xlu1 %v1811_v13 }
 0x61c   :  { %v1750_v43 = vpop.xlane.xlu1 %1749 }
 0x61d   :  { %v1842_v60 = vsub.f32 %v3488_v29, %v1750_v43  ;;  %v1838_v29 = vsel %vm39_vm0, %v3628_v51, -inf }
 0x61f   :  { %v3589_v62 = vpop.eup %2742  ;;  %v1875_v12 = vmul.f32 1.442695, %v1842_v60 }
 0x620   :  { %v1937_v25 = vsel %vm39_vm0, %v3589_v62, 0.0 }
 0x621   :  { %1938 = vadd.xlane.f32.xlu2 %v1937_v25  ;;  %1833 = vmax.xlane.f32.xlu1 %v1832_v11 }
 0x624   :  { %v1753_v17 = vpop.xlane.xlu1 %1752 }
 0x625   :  { %v1843_v13 = vsub.f32 %v3498_v32, %v1753_v17 }
 0x627   :  { %v1877_v43 = vmul.f32 1.442695, %v1843_v13 }
 0x629   :  { %1791 = vmax.xlane.f32.xlu1 %v1790_v45 }
 0x62c   :  { %v3599_v56 = vpop.xlane.xlu1 %1800 }
 0x62f   :  { %v3601_v57 = vpop.xlane.xlu2 %1779 }
 0x631   :  { %1821 = vmax.xlane.f32.xlu1 %v1820_v30 }
 0x634   :  { %v1756_v15 = vpop.xlane.xlu1 %1755 }
 0x635   :  { %v1844_v23 = vsub.f32 %v3510_v21, %v1756_v15 }
 0x637   :  { %v1879_v50 = vmul.f32 1.442695, %v1844_v23  ;;  %v1759_v49 = vpop.xlane.xlu2 %1758 }
 0x638   :  { %v1845_v28 = vsub.f32 %v3520_v5, %v1759_v49 }
 0x639   :  { %2744 = vpow2.f32 %v1879_v50  ;;  %1794 = vmax.xlane.f32.xlu1 %v1793_v48 }
 0x63a   :  { %v1881_v47 = vmul.f32 1.442695, %v1845_v28 }
 0x63c   :  { %v3609_v59 = vpop.xlane.xlu1 %1824  ;;  %2746 = vpow2.f32 %v1881_v47 }
 0x63d   :  { %2748 = vpow2.f32 %v1875_v12 }
 0x63f   :  { %v3611_v54 = vpop.eup %2744 }
 0x640   :  { %v1946_v21 = vsel %vm39_vm0, %v3611_v54, 0.0 }
 0x641   :  { %1947 = vadd.xlane.f32.xlu0 %v1946_v21  ;;  %1836 = vmax.xlane.f32.xlu1 %v1835_v38 }
 0x642   :  { %v3619_v42 = vpop.eup %2746 }
 0x643   :  { %v1949_v61 = vsel %vm39_vm0, %v3619_v42, 0.0  ;;  %v3636_v45 = vpop.eup %2748 }
 0x644   :  { %v1783_v5 = vpop.xlane.xlu1 %1782 }
 0x645   :  { %v1853_v30 = vsub.f32 %v3538_v2, %v1783_v5 }
 0x647   :  { %v1897_v17 = vmul.f32 1.442695, %v1853_v30 }
 0x649   :  { %1950 = vadd.xlane.f32.xlu0 %v1949_v61  ;;  %1815 = vmax.xlane.f32.xlu1 %v1814_v0 }
 0x64c   :  { %v1807_v31 = vpop.xlane.xlu1 %1806 }
 0x64d   :  { %v1861_v19 = vsub.f32 %v3544_v16, %v1807_v31  ;;  %v1940_v16 = vsel %vm39_vm0, %v3636_v45, 0.0 }
 0x64f   :  { %v1913_v25 = vmul.f32 1.442695, %v1861_v19 }
 0x651   :  { %1839 = vmax.xlane.f32.xlu1 %v1838_v29  ;;  %2750 = vpow2.f32 %v1913_v25 }
 0x652   :  { %2752 = vpow2.f32 %v1877_v43 }
 0x653   :  { %2754 = vpow2.f32 %v1897_v17 }
 0x654   :  { %v3634_v11 = vpop.xlane.xlu1 %1827 }
 0x657   :  { %v3639_v15 = vpop.eup %2750 }
 0x658   :  { %v1997_v32 = vsel %vm39_vm0, %v3639_v15, 0.0  ;;  %v3645_v50 = vpop.eup %2752 }
 0x659   :  { %1941 = vadd.xlane.f32.xlu1 %v1940_v16  ;;  %1998 = vadd.xlane.f32.xlu2 %v1997_v32  ;;  %v1943_v2 = vsel %vm39_vm0, %v3645_v50, 0.0  ;;  %v3650_v47 = vpop.eup %2754  ;;  %v3671_v32 = vpop.xlane.xlu0 %1776 }
 0x65a   :  { %v1973_v60 = vsel %vm39_vm0, %v3650_v47, 0.0 }
 0x65c   :  { %v1786_v23 = vpop.xlane.xlu1 %1785 }
 0x65d   :  { %v1854_v49 = vsub.f32 %v3558_v26, %v1786_v23 }
 0x65f   :  { %v1899_v28 = vmul.f32 1.442695, %v1854_v49 }
 0x661   :  { %1944 = vadd.xlane.f32.xlu1 %v1943_v2  ;;  %2756 = vpow2.f32 %v1899_v28 }
 0x664   :  { %v1762_v48 = vpop.xlane.xlu1 %1761 }
 0x665   :  { %v1846_v21 = vsub.f32 %v3528_v6, %v1762_v48 }
 0x667   :  { %v1883_v38 = vmul.f32 1.442695, %v1846_v21  ;;  %v3653_v5 = vpop.eup %2756 }
 0x668   :  { %v1976_v26 = vsel %vm39_vm0, %v3653_v5, 0.0 }
 0x669   :  { %1974 = vadd.xlane.f32.xlu1 %v1973_v60  ;;  %2758 = vpow2.f32 %v1883_v38  ;;  %1977 = vadd.xlane.f32.xlu0 %v1976_v26 }
 0x66c   :  { %v1831_v61 = vpop.xlane.xlu1 %1830 }
 0x66d   :  { %v1869_v0 = vsub.f32 %v3568_v33, %v1831_v61  ;;  %v1867_v33 = vsub.f32 %v3526_v36, %v3609_v59 }
 0x66f   :  { %v1929_v12 = vmul.f32 1.442695, %v1869_v0  ;;  %v3660_v31 = vpop.eup %2758  ;;  %v1925_v16 = vmul.f32 1.442695, %v1867_v33 }
 0x670   :  { %v1952_v6 = vsel %vm39_vm0, %v3660_v31, 0.0 }
 0x671   :  { %2760 = vpow2.f32 %v1929_v12  ;;  %1953 = vadd.xlane.f32.xlu2 %v1952_v6 }
 0x674   :  { %v1810_v19 = vpop.xlane.xlu1 %1809 }
 0x677   :  { %v3664_v13 = vpop.eup %2760 }
 0x678   :  { %v2021_v25 = vsel %vm39_vm0, %v3664_v13, 0.0 }
 0x679   :  { %2022 = vadd.xlane.f32.xlu0 %v2021_v25 }
 0x67c   :  { %v1789_v29 = vpop.xlane.xlu1 %1788 }
 0x67d   :  { %v1855_v43 = vsub.f32 %v3576_v39, %v1789_v29  ;;  %v1768_v39 = vpop.xlane.xlu0 %1767 }
 0x67e   :  { %v1848_v38 = vsub.f32 %v3546_v35, %v1768_v39 }
 0x67f   :  { %v1901_v30 = vmul.f32 1.442695, %v1855_v43 }
 0x680   :  { %v1887_v61 = vmul.f32 1.442695, %v1848_v38  ;;  %v1868_v38 = vsub.f32 %v3552_v22, %v3634_v11  ;;  %v1819_v22 = vpop.xlane.xlu2 %1818 }
 0x681   :  { %2762 = vpow2.f32 %v1901_v30 }
 0x682   :  { %2764 = vpow2.f32 %v1925_v16 }
 0x684   :  { %v1765_v17 = vpop.xlane.xlu1 %1764 }
 0x685   :  { %v1847_v23 = vsub.f32 %v3536_v37, %v1765_v17 }
 0x687   :  { %v3674_v49 = vpop.eup %2762  ;;  %v1885_v28 = vmul.f32 1.442695, %v1847_v23 }
 0x688   :  { %v1979_v2 = vsel %vm39_vm0, %v3674_v49, 0.0  ;;  %v3678_v36 = vpop.eup %2764 }
 0x689   :  { %2766 = vpow2.f32 %v1885_v28  ;;  %1980 = vadd.xlane.f32.xlu0 %v1979_v2  ;;  %v2015_v60 = vsel %vm39_vm0, %v3678_v36, 0.0 }
 0x68c   :  { %v1813_v48 = vpop.xlane.xlu1 %1812 }
 0x68d   :  { %v1863_v59 = vsub.f32 %v3583_v9, %v1813_v48  ;;  %v1862_v9 = vsub.f32 %v3572_v52, %v1810_v19 }
 0x68f   :  { %v3681_v21 = vpop.eup %2766  ;;  %v1917_v37 = vmul.f32 1.442695, %v1863_v59  ;;  %v1915_v29 = vmul.f32 1.442695, %v1862_v9  ;;  %v1852_v9 = vsub.f32 %v3514_v20, %v3601_v57  ;;  %v1865_v20 = vsub.f32 %v3502_v58, %v1819_v22 }
 0x690   :  { %v1955_v26 = vsel %vm39_vm0, %v3681_v21, 0.0 }
 0x691   :  { %2768 = vpow2.f32 %v1917_v37  ;;  %2016 = vadd.xlane.f32.xlu0 %v2015_v60  ;;  %1956 = vadd.xlane.f32.xlu2 %v1955_v26  ;;  %v1927_v60 = vmul.f32 1.442695, %v1868_v38 }
 0x692   :  { %2770 = vpow2.f32 %v1887_v61 }
 0x694   :  { %v1834_v0 = vpop.xlane.xlu1 %1833 }
 0x695   :  { %v1870_v12 = vsub.f32 %v3587_v46, %v1834_v0  ;;  %v1859_v0 = vsub.f32 %v3508_v8, %v3599_v56  ;;  %v1851_v8 = vsub.f32 %v3504_v53, %v3671_v32  ;;  %v1921_v53 = vmul.f32 1.442695, %v1865_v20 }
 0x697   :  { %v3689_v6 = vpop.eup %2768  ;;  %v1931_v35 = vmul.f32 1.442695, %v1870_v12  ;;  %v1909_v11 = vmul.f32 1.442695, %v1859_v0 }
 0x698   :  { %v2003_v25 = vsel %vm39_vm0, %v3689_v6, 0.0  ;;  %v3694_v33 = vpop.eup %2770 }
 0x699   :  { %2772 = vpow2.f32 %v1931_v35  ;;  %2004 = vadd.xlane.f32.xlu1 %v2003_v25  ;;  %v1958_v52 = vsel %vm39_vm0, %v3694_v33, 0.0  ;;  %v1895_v25 = vmul.f32 1.442695, %v1852_v9 }
 0x69a   :  { %2774 = vpow2.f32 %v1915_v29 }
 0x69c   :  { %v1792_v43 = vpop.xlane.xlu1 %1791 }
 0x69d   :  { %v1856_v30 = vsub.f32 %v3595_v55, %v1792_v43 }
 0x69f   :  { %v3697_v16 = vpop.eup %2772  ;;  %v1903_v46 = vmul.f32 1.442695, %v1856_v30 }
 0x6a0   :  { %v2024_v17 = vsel %vm39_vm0, %v3697_v16, 0.0  ;;  %v3703_v23 = vpop.eup %2774 }
 0x6a1   :  { %2776 = vpow2.f32 %v1903_v46  ;;  %2025 = vadd.xlane.f32.xlu2 %v2024_v17  ;;  %1959 = vadd.xlane.f32.xlu1 %v1958_v52  ;;  %v2000_v2 = vsel %vm39_vm0, %v3703_v23, 0.0  ;;  %v1893_v52 = vmul.f32 1.442695, %v1851_v8 }
 0x6a4   :  { %v1822_v19 = vpop.xlane.xlu1 %1821 }
 0x6a5   :  { %v1866_v43 = vsub.f32 %v3516_v7, %v1822_v19 }
 0x6a7   :  { %v3705_v28 = vpop.eup %2776  ;;  %v1923_v58 = vmul.f32 1.442695, %v1866_v43 }
 0x6a8   :  { %v1982_v55 = vsel %vm39_vm0, %v3705_v28, 0.0 }
 0x6a9   :  { %1983 = vadd.xlane.f32.xlu2 %v1982_v55  ;;  %2001 = vadd.xlane.f32.xlu1 %v2000_v2  ;;  %v1804_v55 = vpop.xlane.xlu0 %1803 }
 0x6ac   :  { %v1795_v39 = vpop.xlane.xlu1 %1794 }
 0x6b4   :  { %v1837_v48 = vpop.xlane.xlu1 %1836 }
 0x6b5   :  { %v1871_v59 = vsub.f32 %v3613_v18, %v1837_v48  ;;  %v1857_v48 = vsub.f32 %v3486_v10, %v1795_v39 }
 0x6b7   :  { %v1933_v37 = vmul.f32 1.442695, %v1871_v59  ;;  %v1860_v59 = vsub.f32 %v3534_v14, %v1804_v55  ;;  %v1905_v0 = vmul.f32 1.442695, %v1857_v48  ;;  %v36_v48 = vld [vmem:[%s3906_s4 + $0x8] sm:$0xff] }
 0x6b9   :  { %2778 = vpow2.f32 %v1933_v37  ;;  %v1911_v14 = vmul.f32 1.442695, %v1860_v59 }
 0x6ba   :  { %2780 = vpow2.f32 %v1927_v60 }
 0x6bc   :  { %v1816_v26 = vpop.xlane.xlu1 %1815 }
 0x6bd   :  { %v1864_v61 = vsub.f32 %v3621_v27, %v1816_v26 }
 0x6bf   :  { %v3717_v12 = vpop.eup %2778  ;;  %v1919_v35 = vmul.f32 1.442695, %v1864_v61  ;;  %v1771_v61 = vpop.xlane.xlu0 %1770 }
 0x6c0   :  { %v2027_v18 = vsel %vm39_vm0, %v3717_v12, 0.0  ;;  %v3723_v27 = vpop.eup %2780  ;;  %v1849_v9 = vsub.f32 %v3484_v63, %v1771_v61 }
 0x6c1   :  { %2782 = vpow2.f32 %v1919_v35  ;;  %2028 = vadd.xlane.f32.xlu2 %v2027_v18  ;;  %v2018_v46 = vsel %vm39_vm0, %v3723_v27, 0.0 }
 0x6c2   :  { %2784 = vpow2.f32 %v1909_v11 }
 0x6c3   :  { %2786 = vpow2.f32 %v1895_v25  ;;  %v1889_v25 = vmul.f32 1.442695, %v1849_v9 }
 0x6c4   :  { %v1840_v29 = vpop.xlane.xlu1 %1839 }
 0x6c5   :  { %v1872_v56 = vsub.f32 %v3628_v51, %v1840_v29  ;;  %v1774_v51 = vpop.xlane.xlu2 %1773 }
 0x6c6   :  { %v1850_v7 = vsub.f32 %v3494_v34, %v1774_v51 }
 0x6c7   :  { %v3729_v57 = vpop.eup %2782  ;;  %v1935_v30 = vmul.f32 1.442695, %v1872_v56  ;;  %v1798_v8 = vpop.xlane.xlu0 %1797 }
 0x6c8   :  { %v2006_v17 = vsel %vm39_vm0, %v3729_v57, 0.0  ;;  %v3736_v32 = vpop.eup %2784  ;;  %v1891_v26 = vmul.f32 1.442695, %v1850_v7  ;;  %v1858_v63 = vsub.f32 %v3496_v4, %v1798_v8 }
 0x6c9   :  { %2788 = vpow2.f32 %v1935_v30  ;;  %2019 = vadd.xlane.f32.xlu2 %v2018_v46  ;;  %2007 = vadd.xlane.f32.xlu0 %v2006_v17  ;;  %v3738_v2 = vpop.eup %2786  ;;  %v1991_v38 = vsel %vm39_vm0, %v3736_v32, 0.0 }
 0x6ca   :  { %2790 = vpow2.f32 %v1893_v52  ;;  %v1970_v37 = vsel %vm39_vm0, %v3738_v2, 0.0  ;;  %v1907_v46 = vmul.f32 1.442695, %v1858_v63 }
 0x6cb   :  { %2792 = vpow2.f32 %v1921_v53 }
 0x6cc   :  { %2794 = vpow2.f32 %v1923_v58  ;;  %v1942_v55 = vpop.xlane.xlu1 %1941  ;;  %v35_v58 = vld [vmem:[%s3906_s4] sm:$0xff] }
 0x6cd   :  { %2796 = vpow2.f32 %v1891_v26  ;;  %v1939_v7 = vpop.xlane.xlu2 %1938 }
 0x6ce   :  { %2798 = vpow2.f32 %v1905_v0 }
 0x6cf   :  { %v3741_v19 = vpop.eup %2788  ;;  %2800 = vpow2.f32 %v1911_v14  ;;  %v1948_v53 = vpop.xlane.xlu0 %1947 }
 0x6d0   :  { %v2030_v60 = vsel %vm39_vm0, %v3741_v19, 0.0  ;;  %v3751_v34 = vpop.eup %2790  ;;  %2802 = vpow2.f32 %v1889_v25 }
 0x6d1   :  { %1992 = vadd.xlane.f32.xlu2 %v1991_v38  ;;  %1971 = vadd.xlane.f32.xlu0 %v1970_v37  ;;  %v3753_v10 = vpop.eup %2792  ;;  %v1967_v22 = vsel %vm39_vm0, %v3751_v34, 0.0  ;;  %2804 = vpow2.f32 %v1907_v46 }
 0x6d2   :  { %2031 = vadd.xlane.f32.xlu1 %v2030_v60  ;;  %v3755_v39 = vpop.eup %2794  ;;  %v2009_v18 = vsel %vm39_vm0, %v3753_v10, 0.0 }
 0x6d3   :  { %v2012_v35 = vsel %vm39_vm0, %v3755_v39, 0.0  ;;  %v3764_v11 = vpop.eup %2796 }
 0x6d4   :  { %v3766_v29 = vpop.eup %2798  ;;  %v1964_v43 = vsel %vm39_vm0, %v3764_v11, 0.0  ;;  %v1945_v59 = vpop.xlane.xlu1 %1944 }
 0x6d5   :  { %v3768_v56 = vpop.eup %2800  ;;  %v1985_v20 = vsel %vm39_vm0, %v3766_v29, 0.0  ;;  %v3791_v37 = vpop.xlane.xlu2 %1998 }
 0x6d6   :  { %v1994_v30 = vsel %vm39_vm0, %v3768_v56, 0.0  ;;  %v3777_v17 = vpop.eup %2802 }
 0x6d7   :  { %v1961_v52 = vsel %vm39_vm0, %v3777_v17, 0.0  ;;  %v3781_v4 = vpop.eup %2804  ;;  %v1951_v38 = vpop.xlane.xlu0 %1950 }
 0x6d8   :  { %v1988_v51 = vsel %vm39_vm0, %v3781_v4, 0.0 }
 0x6d9   :  { %2013 = vadd.xlane.f32.xlu2 %v2012_v35  ;;  %2010 = vadd.xlane.f32.xlu0 %v2009_v18 }
 0x6da   :  { %1968 = vadd.xlane.f32.xlu1 %v1967_v22 }
 0x6dc   :  { %v1975_v26 = vpop.xlane.xlu1 %1974 }
 0x6df   :  { %v1978_v60 = vpop.xlane.xlu0 %1977 }
 0x6e1   :  { %1986 = vadd.xlane.f32.xlu2 %v1985_v20  ;;  %1965 = vadd.xlane.f32.xlu0 %v1964_v43 }
 0x6e2   :  { %1995 = vadd.xlane.f32.xlu1 %v1994_v30 }
 0x6e4   :  { %v1954_v61 = vpop.xlane.xlu2 %1953 }
 0x6ea   :  { %1962 = vadd.xlane.f32.xlu1 %v1961_v52 }
 0x6ec   :  { %v3793_v0 = vpop.xlane.xlu0 %2022 }
 0x6f2   :  { %1989 = vadd.xlane.f32.xlu1 %v1988_v51 }
 0x6f5   :  { %1226 = vperm.xlu0 %2437, %v35_v58  }
 0x6f9   :  { %1231 = vperm.xlu2 %2607, %v36_v48  }
 0x6fc   :  { %v1981_v35 = vpop.xlane.xlu0 %1980 }
 0x704   :  { %v1957_v14 = vpop.xlane.xlu2 %1956 }
 0x705   :  { %2806 = vrcp.f32 %v1957_v14 }
 0x706   :  { %2808 = vrcp.f32 %v1954_v61 }
 0x707   :  { %2810 = vrcp.f32 %v1951_v38 }
 0x70b   :  { %v2807_v25 = vpop.eup %2806 }
 0x70c   :  { %v3795_v9 = vpop.xlane.xlu1 %2004  ;;  %v2071_v8 = vmul.f32 %v2807_v25, %v3681_v21  ;;  %v2809_v63 = vpop.eup %2808 }
 0x70d   :  { %v2811_v20 = vpop.eup %2810  ;;  %v2070_v58 = vmul.f32 %v2809_v63, %v3660_v31 }
 0x70e   :  { %v2103_v51 = vpack.c.bf16 %v2071_v8, %v2071_v8  ;;  %v2069_v38 = vmul.f32 %v2811_v20, %v3619_v42 }
 0x710   :  { %v2143_v14 = vunpack.c.l.b16 %v2103_v51 }
 0x714   :  { %v3797_v18 = vpop.xlane.xlu2 %2025  ;;  %v1960_v22 = vpop.xlane.xlu1 %1959 }
 0x715   :  { %2812 = vrcp.f32 %v1960_v22 }
 0x716   :  { %2814 = vrcp.f32 %v1981_v35  ;;  %v2102_v35 = vpack.c.bf16 %v2070_v58, %v2070_v58 }
 0x717   :  { %2816 = vrcp.f32 %v1975_v26 }
 0x718   :  { %2818 = vrcp.f32 %v1978_v60 }
 0x719   :  { %2820 = vrcp.f32 %v1945_v59 }
 0x71b   :  { %v2813_v43 = vpop.eup %2812 }
 0x71c   :  { %v1984_v30 = vpop.xlane.xlu2 %1983  ;;  %v2815_v46 = vpop.eup %2814  ;;  %v2072_v52 = vmul.f32 %v2813_v43, %v3694_v33  ;;  %v2101_v33 = vpack.c.bf16 %v2069_v38, %v2069_v38 }
 0x71d   :  { %2822 = vrcp.f32 %v1984_v30  ;;  %v2817_v61 = vpop.eup %2816  ;;  %v2079_v21 = vmul.f32 %v2815_v46, %v3674_v49  ;;  %v2142_v49 = vunpack.c.l.b16 %v2102_v35 }
 0x71e   :  { %2824 = vrcp.f32 %v1948_v53  ;;  %v2104_v48 = vpack.c.bf16 %v2072_v52, %v2072_v52  ;;  %v2819_v26 = vpop.eup %2818  ;;  %v2077_v53 = vmul.f32 %v2817_v61, %v3650_v47  ;;  %v2141_v46 = vunpack.c.l.b16 %v2101_v33 }
 0x71f   :  { %v2821_v59 = vpop.eup %2820  ;;  %2826 = vrcp.f32 %v1942_v55  ;;  %v2111_v31 = vpack.c.bf16 %v2079_v21, %v2079_v21  ;;  %v2078_v42 = vmul.f32 %v2819_v26, %v3653_v5 }
 0x720   :  { %v2144_v60 = vunpack.c.l.b16 %v2104_v48  ;;  %v2067_v20 = vmul.f32 %v2821_v59, %v3645_v50  ;;  %2828 = vrcp.f32 %v1939_v7  ;;  %v2109_v58 = vpack.c.bf16 %v2077_v53, %v2077_v53 }
 0x721   :  { %v2191_v52 = vunpack.c.l.b16 %v2111_v31  ;;  %v2147_v38 = vpack.c.b16 %v2142_v49, %v2141_v46  ;;  %2830 = vrcp.f32 %v3795_v9 }
 0x722   :  { %v2148_v25 = vpack.c.b16 %v2144_v60, %v2143_v14  ;;  %v2099_v47 = vpack.c.bf16 %v2067_v20, %v2067_v20  ;;  %v2189_v14 = vunpack.c.l.b16 %v2109_v58 }
 0x723   :  { %v2823_v22 = vpop.eup %2822  ;;  %v2159_v7 = vsel %vm39_vm0, %v2147_v38, 0 }
 0x724   :  { %v2825_v43 = vpop.eup %2824  ;;  %v2080_v8 = vmul.f32 %v2823_v22, %v3705_v28  ;;  %v2162_v63 = vsel %vm39_vm0, %v2148_v25, 0  ;;  %v2110_v28 = vpack.c.bf16 %v2078_v42, %v2078_v42  ;;  %v2139_v60 = vunpack.c.l.b16 %v2099_v47 }
 0x725   :  { %2168 = vmatpush.bf16.xpose.msra.mxu2 %v2162_v63  ;;  %v2068_v55 = vmul.f32 %v2825_v43, %v3611_v54  ;;  %v2827_v48 = vpop.eup %2826 }
 0x726   :  { %v2112_v30 = vpack.c.bf16 %v2080_v8, %v2080_v8  ;;  %v2829_v21 = vpop.eup %2828  ;;  %v2190_v50 = vunpack.c.l.b16 %v2110_v28  ;;  %v2066_v54 = vmul.f32 %v2827_v48, %v3636_v45  ;;  %v2017_v8 = vpop.xlane.xlu0 %2016 }
 0x727   :  { %v2100_v5 = vpack.c.bf16 %v2068_v55, %v2068_v55  ;;  %v2065_v59 = vmul.f32 %v2829_v21, %v3589_v62  ;;  %v2002_v45 = vpop.xlane.xlu1 %2001  ;;  %v2831_v55 = vpop.eup %2830 }
 0x728   :  { %v2192_v51 = vunpack.c.l.b16 %v2112_v30  ;;  %v2195_v22 = vpack.c.b16 %v2190_v50, %v2189_v14  ;;  %v2098_v33 = vpack.c.bf16 %v2066_v54, %v2066_v54  ;;  %2832 = vrcp.f32 %v2002_v45 }
 0x729   :  { %v2140_v35 = vunpack.c.l.b16 %v2100_v5  ;;  %v2097_v43 = vpack.c.bf16 %v2065_v59, %v2065_v59  ;;  %2834 = vrcp.f32 %v3791_v37 }
 0x72a   :  { %v2196_v61 = vpack.c.b16 %v2192_v51, %v2191_v52  ;;  %v2207_v53 = vsel %vm39_vm0, %v2195_v22, 0  ;;  %v2138_v63 = vunpack.c.l.b16 %v2098_v33  ;;  %v3821_v52 = vadd.f32 %v3478_v40, %v3406_v3 }
 0x72b   :  { %v2146_v25 = vpack.c.b16 %v2140_v35, %v2139_v60  ;;  %v2137_v49 = vunpack.c.l.b16 %v2097_v43  ;;  %v2087_v51 = vmul.f32 %v2831_v55, %v3689_v6 }
 0x72c   :  { %v2210_v26 = vsel %vm39_vm0, %v2196_v61, 0  ;;  %v1485_v28 = vpack.c.bf16 %v3821_v52, %v3821_v52 }
 0x72d   :  { %2216 = vmatpush.bf16.xpose.msrb.mxu0 %v2210_v26  ;;  %2169 = vmatpush.bf16.xpose.msra.mxu2 %v2159_v7  ;;  %v2156_v42 = vsel %vm39_vm0, %v2146_v25, 0  ;;  %v2145_v20 = vpack.c.b16 %v2138_v63, %v2137_v49  ;;  %v2119_v40 = vpack.c.bf16 %v2087_v51, %v2087_v51 }
 0x72e   :  { %v2833_v9 = vpop.eup %2832 }
 0x72f   :  { %v2153_v46 = vsel %vm39_vm0, %v2145_v20, 0  ;;  %v2835_v58 = vpop.eup %2834  ;;  %v2086_v6 = vmul.f32 %v2833_v9, %v3703_v23 }
 0x730   :  { %v2085_v21 = vmul.f32 %v2835_v58, %v3639_v15 }
 0x731   :  { %v2118_v50 = vpack.c.bf16 %v2086_v6, %v2086_v6 }
 0x732   :  { %v2117_v60 = vpack.c.bf16 %v2085_v21, %v2085_v21 }
 0x733   :  { %v2238_v15 = vunpack.c.l.b16 %v2118_v50 }
 0x734   :  { %v2029_v31 = vpop.xlane.xlu2 %2028 }
 0x735   :  { %2217 = vmatpush.bf16.xpose.msrb.mxu0 %v2207_v53  ;;  %2170 = vmatpush.bf16.xpose.msra.mxu2 %v2156_v42  ;;  %v2237_v53 = vunpack.c.l.b16 %v2117_v60 }
 0x737   :  { %v2243_v49 = vpack.c.b16 %v2238_v15, %v2237_v53 }
 0x739   :  { %v2255_v58 = vsel %vm39_vm0, %v2243_v49, 0 }
 0x73c   :  { %v2020_v62 = vpop.xlane.xlu2 %2019  ;;  %v2008_v30 = vpop.xlane.xlu0 %2007 }
 0x73d   :  { %2836 = vrcp.f32 %v2008_v30  ;;  %2171 = vmatpush.bf16.xpose.msra.mxu2 %v2153_v46 }
 0x73e   :  { %2838 = vrcp.f32 %v2029_v31 }
 0x73f   :  { %2840 = vrcp.f32 %v3797_v18  ;;  %v2239_v18 = vunpack.c.l.b16 %v2119_v40 }
 0x740   :  { %2842 = vrcp.f32 %v3793_v0 }
 0x743   :  { %v2837_v37 = vpop.eup %2836 }
 0x744   :  { %v1993_v48 = vpop.xlane.xlu2 %1992  ;;  %v1972_v38 = vpop.xlane.xlu0 %1971  ;;  %v2088_v47 = vmul.f32 %v2837_v37, %v3729_v57  ;;  %2423 = vmatmul.msk.bf16.vlgmr.msra.gmra.mxu2 %vm39_vm0, %v1485_v28 }
 0x745   :  { %v2032_v3 = vpop.xlane.xlu1 %2031  ;;  %v2839_v61 = vpop.eup %2838 }
 0x746   :  { %2844 = vrcp.f32 %v2032_v3  ;;  %v2120_v5 = vpack.c.bf16 %v2088_v47, %v2088_v47  ;;  %v2841_v26 = vpop.eup %2840  ;;  %v2095_v0 = vmul.f32 %v2839_v61, %v3717_v12 }
 0x747   :  { %2846 = vrcp.f32 %v1972_v38  ;;  %v2843_v7 = vpop.eup %2842  ;;  %v2094_v23 = vmul.f32 %v2841_v26, %v3697_v16 }
 0x748   :  { %v2240_v14 = vunpack.c.l.b16 %v2120_v5  ;;  %2848 = vrcp.f32 %v2020_v62  ;;  %v2127_v43 = vpack.c.bf16 %v2095_v0, %v2095_v0  ;;  %v2093_v12 = vmul.f32 %v2843_v7, %v3664_v13 }
 0x749   :  { %2850 = vrcp.f32 %v2017_v8  ;;  %v2126_v63 = vpack.c.bf16 %v2094_v23, %v2094_v23 }
 0x74a   :  { %v2244_v57 = vpack.c.b16 %v2240_v14, %v2239_v18  ;;  %v2287_v45 = vunpack.c.l.b16 %v2127_v43  ;;  %v2125_v30 = vpack.c.bf16 %v2093_v12, %v2093_v12 }
 0x74b   :  { %v2286_v55 = vunpack.c.l.b16 %v2126_v63 }
 0x74c   :  { %v2014_v54 = vpop.xlane.xlu2 %2013  ;;  %v2011_v35 = vpop.xlane.xlu0 %2010  ;;  %v2258_v25 = vsel %vm39_vm0, %v2244_v57, 0  ;;  %v2285_v47 = vunpack.c.l.b16 %v2125_v30 }
 0x74d   :  { %v2845_v59 = vpop.eup %2844  ;;  %v1969_v22 = vpop.xlane.xlu1 %1968  ;;  %2264 = vmatpush.bf16.xpose.msra.mxu1 %v2258_v25 }
 0x74e   :  { %v2096_v33 = vmul.f32 %v2845_v59, %v3741_v19  ;;  %v2847_v31 = vpop.eup %2846  ;;  %2852 = vrcp.f32 %v1969_v22  ;;  %v2291_v6 = vpack.c.b16 %v2286_v55, %v2285_v47 }
 0x74f   :  { %2854 = vrcp.f32 %v1993_v48  ;;  %v2849_v16 = vpop.eup %2848  ;;  %v2076_v62 = vmul.f32 %v2847_v31, %v3738_v2 }
 0x750   :  { %v2128_v42 = vpack.c.bf16 %v2096_v33, %v2096_v33  ;;  %v2851_v8 = vpop.eup %2850  ;;  %2856 = vrcp.f32 %v2014_v54  ;;  %v2092_v28 = vmul.f32 %v2849_v16, %v3723_v27  ;;  %v2303_v7 = vsel %vm39_vm0, %v2291_v6, 0 }
 0x751   :  { %2858 = vrcp.f32 %v2011_v35  ;;  %v2108_v38 = vpack.c.bf16 %v2076_v62, %v2076_v62  ;;  %v2091_v3 = vmul.f32 %v2851_v8, %v3678_v36 }
 0x752   :  { %v2288_v20 = vunpack.c.l.b16 %v2128_v42  ;;  %v2124_v5 = vpack.c.bf16 %v2092_v28, %v2092_v28 }
 0x753   :  { %v2188_v26 = vunpack.c.l.b16 %v2108_v38  ;;  %v2123_v50 = vpack.c.bf16 %v2091_v3, %v2091_v3 }
 0x754   :  { %v1987_v19 = vpop.xlane.xlu2 %1986  ;;  %v2292_v46 = vpack.c.b16 %v2288_v20, %v2287_v45  ;;  %v2853_v51 = vpop.eup %2852  ;;  %v2284_v35 = vunpack.c.l.b16 %v2124_v5 }
 0x755   :  { %v1966_v13 = vpop.xlane.xlu0 %1965  ;;  %v1996_v9 = vpop.xlane.xlu1 %1995  ;;  %2265 = vmatpush.bf16.xpose.msra.mxu1 %v2255_v58  ;;  %v2075_v2 = vmul.f32 %v2853_v51, %v3751_v34  ;;  %v2873_v34 = vld [vmem:[%s3902_s0 + $0x8] sm:$0xff]  ;;  %v2283_v15 = vunpack.c.l.b16 %v2123_v50 }
 0x756   :  { %v2855_v37 = vpop.eup %2854  ;;  %v2306_v48 = vsel %vm39_vm0, %v2292_v46, 0  ;;  %2860 = vrcp.f32 %v1996_v9  ;;  %v1223_v14 = vadd.f32 %v2873_v34, %v3476_v41 }
 0x757   :  { %2312 = vmatpush.bf16.xpose.msrb.mxu2 %v2306_v48  ;;  %2862 = vrcp.f32 %v1966_v13  ;;  %v2107_v40 = vpack.c.bf16 %v2075_v2, %v2075_v2  ;;  %v2083_v61 = vmul.f32 %v2855_v37, %v3736_v32  ;;  %v2857_v21 = vpop.eup %2856  ;;  %v2290_v43 = vpack.c.b16 %v2284_v35, %v2283_v15  ;;  %v2876_v35 = vld [vmem:[%s3902_s0 + $0x10] sm:$0xff] }
 0x758   :  { %v2859_v18 = vpop.eup %2858  ;;  %v2090_v23 = vmul.f32 %v2857_v21, %v3755_v39  ;;  %v1301_v37 = vadd.f32 %v3492_v1, %v3415_v24 }
 0x759   :  { %v2187_v27 = vunpack.c.l.b16 %v2107_v40  ;;  %v2115_v54 = vpack.c.bf16 %v2083_v61, %v2083_v61  ;;  %v2089_v25 = vmul.f32 %v2859_v18, %v3753_v10  ;;  %v2874_v10 = vld [vmem:[%s3902_s0] sm:$0xff]  ;;  %v2300_v45 = vsel %vm39_vm0, %v2290_v43, 0 }
 0x75a   :  { %v2122_v42 = vpack.c.bf16 %v2090_v23, %v2090_v23  ;;  %v1222_v49 = vadd.f32 %v2874_v10, %v3474_v44  ;;  %v1482_v40 = vrot.slane %v1301_v37, 4  ;;  %v1487_v1 = vpack.c.bf16 %v1301_v37, %v1301_v37 }
 0x75b   :  { %v2194_v36 = vpack.c.b16 %v2188_v26, %v2187_v27  ;;  %v2235_v12 = vunpack.c.l.b16 %v2115_v54  ;;  %v2121_v53 = vpack.c.bf16 %v2089_v25, %v2089_v25 }
 0x75c   :  { %v3848_v0 = vpop.permute.xlu2 %1231  ;;  %v2861_v57 = vpop.eup %2860  ;;  %v1488_v27 = vpack.c.bf16 %v1482_v40, %v1482_v40 }
 0x75d   :  { %v1235_v32 = vadd.f32 %v3848_v0, %v1223_v14  ;;  %v1963_v60 = vpop.xlane.xlu1 %1962  ;;  %v2863_v59 = vpop.eup %2862  ;;  %v2204_v22 = vsel %vm39_vm0, %v2194_v36, 0  ;;  %v2084_v41 = vmul.f32 %v2861_v57, %v3768_v56  ;;  %v2281_v8 = vunpack.c.l.b16 %v2121_v53 }
 0x75e   :  { %2864 = vrcp.f32 %v1963_v60  ;;  %2218 = vmatpush.bf16.xpose.msrb.mxu0 %v2204_v22  ;;  %v2074_v39 = vmul.f32 %v2863_v59, %v3764_v11  ;;  %v2875_v60 = vld [vmem:[%s3905_s3] sm:$0xff] }
 0x75f   :  { %1237 = vst.msk [vmem:[%s3907_s5 + $0x8] sm:$0xff] %vm39_vm0, %v1235_v32  ;;  %2313 = vmatpush.bf16.xpose.msrb.mxu2 %v2303_v7  ;;  %2866 = vrcp.f32 %v1987_v19  ;;  %v2116_v33 = vpack.c.bf16 %v2084_v41, %v2084_v41  ;;  %v2282_v19 = vunpack.c.l.b16 %v2122_v42  ;;  %v2877_v41 = vld [vmem:[%s3902_s0 + $0x18] sm:$0xff] }
 0x760   :  { %v2106_v62 = vpack.c.bf16 %v2074_v39, %v2074_v39 }
 0x761   :  { %v2236_v31 = vunpack.c.l.b16 %v2116_v33 }
 0x762   :  { %v2186_v9 = vunpack.c.l.b16 %v2106_v62 }
 0x763   :  { %v2242_v63 = vpack.c.b16 %v2236_v31, %v2235_v12 }
 0x764   :  { %v2865_v56 = vpop.eup %2864 }
 0x765   :  { %v1990_v16 = vpop.xlane.xlu1 %1989  ;;  %v2073_v20 = vmul.f32 %v2865_v56, %v3777_v17  ;;  %v2867_v30 = vpop.eup %2866  ;;  %v2252_v11 = vsel %vm39_vm0, %v2242_v63, 0  ;;  %v2289_v17 = vpack.c.b16 %v2282_v19, %v2281_v8 }
 0x766   :  { %2868 = vrcp.f32 %v1990_v16  ;;  %2266 = vmatpush.bf16.xpose.msra.mxu1 %v2252_v11  ;;  %v2081_v44 = vmul.f32 %v2867_v30, %v3766_v29  ;;  %v1481_v29 = vrot.slane %v3821_v52, 4 }
 0x767   :  { %2314 = vmatpush.bf16.xpose.msrb.mxu2 %v2300_v45  ;;  %v1227_v46 = vpop.permute.xlu0 %1226  ;;  %v2105_v55 = vpack.c.bf16 %v2073_v20, %v2073_v20  ;;  %v2297_v47 = vsel %vm39_vm0, %v2289_v17, 0 }
 0x768   :  { %v1234_v51 = vadd.f32 %v1227_v46, %v1222_v49  ;;  %v2113_v38 = vpack.c.bf16 %v2081_v44, %v2081_v44  ;;  %v1486_v5 = vpack.c.bf16 %v1481_v29, %v1481_v29 }
 0x769   :  { %v2185_v13 = vunpack.c.l.b16 %v2105_v55 }
 0x76a   :  { %1236 = vst.msk [vmem:[%s3907_s5] sm:$0xff] %vm39_vm0, %v1234_v51  ;;  %v2233_v6 = vunpack.c.l.b16 %v2113_v38 }
 0x76b   :  { %v2193_v58 = vpack.c.b16 %v2186_v9, %v2185_v13 }
 0x76c   :  { %v2869_v28 = vpop.eup %2868 }
 0x76d   :  { %v2201_v48 = vsel %vm39_vm0, %v2193_v58, 0  ;;  %v2082_v2 = vmul.f32 %v2869_v28, %v3781_v4 }
 0x76e   :  { %2219 = vmatpush.bf16.xpose.msrb.mxu0 %v2201_v48 }
 0x76f   :  { %2315 = vmatpush.bf16.xpose.msrb.mxu2 %v2297_v47  ;;  %v2114_v3 = vpack.c.bf16 %v2082_v2, %v2082_v2 }
 0x771   :  { %v2234_v61 = vunpack.c.l.b16 %v2114_v3 }
 0x773   :  { %v2241_v21 = vpack.c.b16 %v2234_v61, %v2233_v6 }
 0x775   :  { %2424 = vmatmul.msk.bf16.vlgmr.msrb.gmra.mxu0 %vm39_vm0, %v1486_v5  ;;  %v2249_v24 = vsel %vm39_vm0, %v2241_v21, 0 }
 0x776   :  { %2426 = vmatmul.msk.bf16.vlgmr.msrb.gmra.mxu2 %vm39_vm0, %v1488_v27  ;;  %2267 = vmatpush.bf16.xpose.msra.mxu1 %v2249_v24 }
 0x77d   :  { %2425 = vmatmul.msk.bf16.vlgmr.msra.gmra.mxu1 %vm39_vm0, %v1487_v1 }
 0x7c7   :  { %v2173_v4 = vpop.f32.mrf.mxu2 }
 0x7c8   :  { %2325 = vst [vmem:[#allocation1] ss:$2 sm:$0xff] %v2173_v4 }
 0x7cf   :  { %v2175_v52 = vpop.f32.mrf.mxu2 }
 0x7f2   :  { %v2221_v26 = vpop.f32.mrf.mxu0 }
 0x7f3   :  { %2327 = vst [vmem:[#allocation1 + $0x1] ss:$2 sm:$0xff] %v2221_v26 }
 0x7f9   :  { %v2317_v18 = vpop.f32.mrf.mxu2 }
 0x7fa   :  { %2331 = vst [vmem:[#allocation1 + $0x11] ss:$2 sm:$0xff] %v2317_v18  ;;  %v2223_v34 = vpop.f32.mrf.mxu0  ;;  %v2269_v14 = vpop.f32.mrf.mxu1  ;;  %v2332_v7 = vld.sshfl [vmem:[#allocation1] sm:$0xff pattern:$0x75316420] }
 0x7fb   :  { %2329 = vst [vmem:[#allocation1 + $0x10] ss:$2 sm:$0xff] %v2269_v14 }
 0x801   :  { %v2319_v50 = vpop.f32.mrf.mxu2 }
 0x802   :  { %v2271_v36 = vpop.f32.mrf.mxu1  ;;  %v2333_v57 = vld.sshfl [vmem:[#allocation1 + $0x10] sm:$0xff pattern:$0x75316420] }
 0x803   :  { %v2336_v32 = vpack.c.bf16 %v2333_v57, %v2332_v7 }
 0x805   :  { %2344 = vmatpush.bf16.msra.mxu0 %v2336_v32 }
 0x808   :  { %2427 = vmatmul.msk.bf16.vlgmr.msra.gmra.mxu0 %vm130_vm5, %v2875_v60 }
 0x885   :  { %v2346_v54 = vpop.f32.mrf.mxu0 }
 0x886   :  { %v2351_v23 = vadd.f32 %v2876_v35, %v2346_v54 }
 0x888   :  { %v2353_v59 = vadd.f32 %v2351_v23, %v1227_v46 }
 0x88a   :  { %2428 = vst.msk [vmem:[%s3907_s5 + $0x10] sm:$0xff] %vm39_vm0, %v2353_v59 }
 0x88d   :  { %v2348_v22 = vpop.f32.mrf.mxu0 }
 0x88e   :  { %v2352_v25 = vadd.f32 %v2877_v41, %v2348_v22 }
 0x890   :  { %v2354_v15 = vadd.f32 %v2352_v25, %v3848_v0 }
 0x892   :  { %2429 = vst.msk [vmem:[%s3907_s5 + $0x18] sm:$0xff] %vm39_vm0, %v2354_v15 }

</bundles_post_ra>
